<compile_context>
chip_gen: v7x
topology: tpu7x:2x2x1
jax: 0.10.0
libtpu: 0.0.40
codegen_flags: <defaults>
</compile_context>

<pallas_src>
import functools

import jax
import jax.numpy as jnp
from jax.experimental import pallas as pl
from jax.experimental.pallas import tpu as pltpu


# ----------------------------- helpers ------------------------------------- #

def _round_up(n, m):
    return ((n + m - 1) // m) * m


def _pick_row_tile(n, tile_m):
    return tile_m if n >= tile_m else _round_up(n, 8)


def _pad_rows(x2d, n_pad):
    n = x2d.shape[0]
    if n_pad == n:
        return x2d
    return jnp.pad(x2d, ((0, n_pad - n), (0, 0)))


# ----------------------------- Pallas kernels ------------------------------ #

def _linear_kernel(x_ref, w_ref, b_ref, o_ref):
    # x: (tm, In), w: (In, Out) pre-transposed, b: (1, Out)
    o_ref[...] = (
        jnp.dot(x_ref[...], w_ref[...], preferred_element_type=jnp.float32)
        + b_ref[...]
    ).astype(o_ref.dtype)


def _outproj_add_ln_kernel(a_ref, res_ref, w_ref, b_ref, g_ref, beta_ref, o_ref):
    # y = a @ Wo + bo + residual ; LayerNorm(y), eps = 1e-5 (torch default)
    y = (jnp.dot(a_ref[...], w_ref[...], preferred_element_type=jnp.float32)
         + b_ref[...] + res_ref[...])
    mu = jnp.mean(y, axis=-1, keepdims=True)
    var = jnp.mean((y - mu) ** 2, axis=-1, keepdims=True)
    o_ref[...] = ((y - mu) * jax.lax.rsqrt(var + 1e-5) * g_ref[...]
                  + beta_ref[...]).astype(o_ref.dtype)


def _ffn_add_ln_kernel(x_ref, res_ref, w1_ref, b1_ref, w2_ref, b2_ref,
                       g_ref, beta_ref, o_ref):
    # relu(x @ W1 + b1) @ W2 + b2 + residual ; LayerNorm
    # TODO(synk): for realistic E/F (e.g. 1024/4096) tile W1/W2 along F with an f32
    # accumulator scratch so resident weights fit v7x's 64 MiB VMEM.
    h = jnp.maximum(
        jnp.dot(x_ref[...], w1_ref[...], preferred_element_type=jnp.float32)
        + b1_ref[...], 0.0)
    y = (jnp.dot(h, w2_ref[...], preferred_element_type=jnp.float32)
         + b2_ref[...] + res_ref[...])
    mu = jnp.mean(y, axis=-1, keepdims=True)
    var = jnp.mean((y - mu) ** 2, axis=-1, keepdims=True)
    o_ref[...] = ((y - mu) * jax.lax.rsqrt(var + 1e-5) * g_ref[...]
                  + beta_ref[...]).astype(o_ref.dtype)


def _self_attn_kernel(q_ref, k_ref, v_ref, m_ref, o_ref):
    # one (batch, head) slice per grid step; q already scaled by 1/sqrt(Dh)
    # TODO(synk): for long sequences block over Tk with an online softmax and pack
    # multiple heads per block when Dh < 128 to keep the lane axis dense.
    q = q_ref[0, 0]                     # (Tq, Dh)
    k = k_ref[0, 0]                     # (Tk, Dh)
    v = v_ref[0, 0]                     # (Tk, Dh)
    s = jax.lax.dot_general(q, k, (((1,), (1,)), ((), ())),
                            preferred_element_type=jnp.float32)
    s = s + m_ref[...]
    mx = jnp.max(s, axis=-1, keepdims=True)
    e = jnp.exp(s - mx)
    inv = pl.reciprocal(jnp.sum(e, axis=-1, keepdims=True), approx=True)
    p = e * inv
    o_ref[0, 0] = jnp.dot(p.astype(v.dtype), v,
                          preferred_element_type=jnp.float32).astype(o_ref.dtype)


def _cross_attn_kernel(q_ref, k_ref, v_ref, o_ref, p_ref, *, inv_heads):
    # encoder-decoder attention: no mask; head-averaged attention weights are
    # accumulated in-kernel over the head grid axis (marked "arbitrary").
    h = pl.program_id(1)

    @pl.when(h == 0)
    def _():
        p_ref[...] = jnp.zeros_like(p_ref)

    q = q_ref[0, 0]
    k = k_ref[0, 0]
    v = v_ref[0, 0]
    s = jax.lax.dot_general(q, k, (((1,), (1,)), ((), ())),
                            preferred_element_type=jnp.float32)
    mx = jnp.max(s, axis=-1, keepdims=True)
    e = jnp.exp(s - mx)
    inv = pl.reciprocal(jnp.sum(e, axis=-1, keepdims=True), approx=True)
    p = e * inv
    p_ref[...] += (p * inv_heads)[None].astype(p_ref.dtype)
    o_ref[0, 0] = jnp.dot(p.astype(v.dtype), v,
                          preferred_element_type=jnp.float32).astype(o_ref.dtype)


# ------------------------------ Pallas wrappers ----------------------------- #

_TILE_M = 256  # row tile for dense kernels (multiple of MXU systolic dim)


def pallas_linear(x2d, w, b, *, tile_m=_TILE_M):
    """x2d: (N, In), w: (In, Out) pre-transposed, b: (Out,) -> (N, Out)."""
    N, In = x2d.shape
    Out = w.shape[1]
    tm = _pick_row_tile(N, tile_m)
    n_pad = _round_up(N, tm)
    xp = _pad_rows(x2d, n_pad)
    out = pl.pallas_call(
        _linear_kernel,
        out_shape=jax.ShapeDtypeStruct((n_pad, Out), x2d.dtype),
        grid=(n_pad // tm,),
        in_specs=[
            pl.BlockSpec((tm, In), lambda i: (i, 0)),
            pl.BlockSpec((In, Out), lambda i: (0, 0)),   # resident weight
            pl.BlockSpec((1, Out), lambda i: (0, 0)),
        ],
        out_specs=pl.BlockSpec((tm, Out), lambda i: (i, 0)),
        compiler_params=pltpu.CompilerParams(dimension_semantics=("parallel",)),
    )(xp, w, b.reshape(1, Out))
    return out[:N]


def pallas_outproj_add_ln(a2d, res2d, w, b, gamma, beta, *, tile_m=_TILE_M):
    """(a2d @ w + b + res2d) -> LayerNorm. a2d: (N, E_in), w: (E_in, E)."""
    N, E_in = a2d.shape
    E = w.shape[1]
    tm = _pick_row_tile(N, tile_m)
    n_pad = _round_up(N, tm)
    ap = _pad_rows(a2d, n_pad)
    rp = _pad_rows(res2d, n_pad)
    out = pl.pallas_call(
        _outproj_add_ln_kernel,
        out_shape=jax.ShapeDtypeStruct((n_pad, E), a2d.dtype),
        grid=(n_pad // tm,),
        in_specs=[
            pl.BlockSpec((tm, E_in), lambda i: (i, 0)),
            pl.BlockSpec((tm, E), lambda i: (i, 0)),
            pl.BlockSpec((E_in, E), lambda i: (0, 0)),
            pl.BlockSpec((1, E), lambda i: (0, 0)),
            pl.BlockSpec((1, E), lambda i: (0, 0)),
            pl.BlockSpec((1, E), lambda i: (0, 0)),
        ],
        out_specs=pl.BlockSpec((tm, E), lambda i: (i, 0)),
        compiler_params=pltpu.CompilerParams(dimension_semantics=("parallel",)),
    )(ap, rp, w, b.reshape(1, E), gamma.reshape(1, E), beta.reshape(1, E))
    return out[:N]


def pallas_ffn_add_ln(x2d, res2d, w1, b1, w2, b2, gamma, beta, *, tile_m=_TILE_M):
    """LayerNorm(relu(x @ W1 + b1) @ W2 + b2 + res)."""
    N, E = x2d.shape
    F = w1.shape[1]
    tm = _pick_row_tile(N, tile_m)
    n_pad = _round_up(N, tm)
    xp = _pad_rows(x2d, n_pad)
    rp = _pad_rows(res2d, n_pad)
    out = pl.pallas_call(
        _ffn_add_ln_kernel,
        out_shape=jax.ShapeDtypeStruct((n_pad, E), x2d.dtype),
        grid=(n_pad // tm,),
        in_specs=[
            pl.BlockSpec((tm, E), lambda i: (i, 0)),
            pl.BlockSpec((tm, E), lambda i: (i, 0)),
            pl.BlockSpec((E, F), lambda i: (0, 0)),
            pl.BlockSpec((1, F), lambda i: (0, 0)),
            pl.BlockSpec((F, E), lambda i: (0, 0)),
            pl.BlockSpec((1, E), lambda i: (0, 0)),
            pl.BlockSpec((1, E), lambda i: (0, 0)),
            pl.BlockSpec((1, E), lambda i: (0, 0)),
        ],
        out_specs=pl.BlockSpec((tm, E), lambda i: (i, 0)),
        compiler_params=pltpu.CompilerParams(dimension_semantics=("parallel",)),
    )(xp, rp, w1, b1.reshape(1, F), w2, b2.reshape(1, F if False else E) if False
      else b2.reshape(1, E), gamma.reshape(1, E), beta.reshape(1, E))
    return out[:N]


def pallas_self_attention(q, k, v, mask):
    """q, k, v: (B, H, T, Dh); mask: (Tq, Tk) additive (finite negatives)."""
    B, H, Tq, Dh = q.shape
    Tk = k.shape[2]
    return pl.pallas_call(
        _self_attn_kernel,
        out_shape=jax.ShapeDtypeStruct((B, H, Tq, Dh), q.dtype),
        grid=(B, H),
        in_specs=[
            pl.BlockSpec((1, 1, Tq, Dh), lambda b, h: (b, h, 0, 0)),
            pl.BlockSpec((1, 1, Tk, Dh), lambda b, h: (b, h, 0, 0)),
            pl.BlockSpec((1, 1, Tk, Dh), lambda b, h: (b, h, 0, 0)),
            pl.BlockSpec((Tq, Tk), lambda b, h: (0, 0)),
        ],
        out_specs=pl.BlockSpec((1, 1, Tq, Dh), lambda b, h: (b, h, 0, 0)),
        compiler_params=pltpu.CompilerParams(
            dimension_semantics=("parallel", "parallel")),
    )(q, k, v, mask)


def pallas_cross_attention(q, k, v, num_heads):
    """q: (B, H, Tq, Dh), k/v: (B, H, Tk, Dh). Returns (out, head-avg probs)."""
    B, H, Tq, Dh = q.shape
    Tk = k.shape[2]
    kern = functools.partial(_cross_attn_kernel, inv_heads=1.0 / num_heads)
    out, probs = pl.pallas_call(
        kern,
        out_shape=(
            jax.ShapeDtypeStruct((B, H, Tq, Dh), q.dtype),
            jax.ShapeDtypeStruct((B, Tq, Tk), jnp.float32),
        ),
        grid=(B, H),
        in_specs=[
            pl.BlockSpec((1, 1, Tq, Dh), lambda b, h: (b, h, 0, 0)),
            pl.BlockSpec((1, 1, Tk, Dh), lambda b, h: (b, h, 0, 0)),
            pl.BlockSpec((1, 1, Tk, Dh), lambda b, h: (b, h, 0, 0)),
        ],
        out_specs=(
            pl.BlockSpec((1, 1, Tq, Dh), lambda b, h: (b, h, 0, 0)),
            pl.BlockSpec((1, Tq, Tk), lambda b, h: (b, 0, 0)),   # revisited over h
        ),
        compiler_params=pltpu.CompilerParams(
            dimension_semantics=("parallel", "arbitrary")),
    )(q, k, v)
    return out, probs


# --------------------------- module forward (glue) -------------------------- #

def _self_attn_block(x, p, num_heads, attn_mask):
    """Fused-QKV self attention; returns pre-out-projection heads as (T*B, E)."""
    T, B, E = x.shape
    Dh = E // num_heads
    qkv2d = pallas_linear(x.reshape(T * B, E), p["qkv_w"], p["qkv_b"])  # (T*B, 3E)
    qkv = qkv2d.reshape(T, B, 3, num_heads, Dh)
    qkv = jnp.transpose(qkv, (2, 1, 3, 0, 4))            # (3, B, H, T, Dh)
    q, k, v = qkv[0], qkv[1], qkv[2]
    o = pallas_self_attention(q, k, v, attn_mask)         # (B, H, T, Dh)
    return jnp.transpose(o, (2, 0, 1, 3)).reshape(T * B, E)


def _cross_attn_block(x, enc, p, num_heads):
    """Encoder-decoder attention; returns ((T*B, E) heads, (B, Tq, Tk) avg probs)."""
    T, B, E = x.shape
    S = enc.shape[0]
    E_enc = enc.shape[-1]
    Dh = E // num_heads
    q2d = pallas_linear(x.reshape(T * B, E), p["q_w"], p["q_b"])         # scaled q
    kv2d = pallas_linear(enc.reshape(S * B, E_enc), p["kv_w"], p["kv_b"])  # (S*B, 2E)
    q = jnp.transpose(q2d.reshape(T, B, num_heads, Dh), (1, 2, 0, 3))    # (B,H,T,Dh)
    kv = jnp.transpose(kv2d.reshape(S, B, 2, num_heads, Dh), (2, 1, 3, 0, 4))
    k, v = kv[0], kv[1]
    o, probs = pallas_cross_attention(q, k, v, num_heads)
    return jnp.transpose(o, (2, 0, 1, 3)).reshape(T * B, E), probs


def decoder_layer_forward(params, x, encoder_out, self_attn_mask, num_heads):
    """Post-norm (normalize_before=False) decoder layer; dropout = identity (eval)."""
    T, B, E = x.shape
    res2d = x.reshape(T * B, E)

    # ---- self attention block (need_weights=False -> no probs emitted) ----
    sa = params["self_attn"]
    heads2d = _self_attn_block(x, sa, num_heads, self_attn_mask)
    # TODO(synk): dropout_module / activation_dropout_module are identity at inference.
    x2d = pallas_outproj_add_ln(heads2d, res2d, sa["o_w"], sa["o_b"],
                                params["sa_ln_w"], params["sa_ln_b"])

    # ---- encoder-decoder attention block ----
    res2d = x2d
    ea = params["enc_attn"]
    heads2d, attn = _cross_attn_block(x2d.reshape(T, B, E), encoder_out, ea, num_heads)
    x2d = pallas_outproj_add_ln(heads2d, res2d, ea["o_w"], ea["o_b"],
                                params["ea_ln_w"], params["ea_ln_b"])

    # ---- feed-forward block (fc1 + relu + fc2 + residual + LN fused) ----
    res2d = x2d
    x2d = pallas_ffn_add_ln(x2d, res2d, params["fc1_w"], params["fc1_b"],
                            params["fc2_w"], params["fc2_b"],
                            params["fl_ln_w"], params["fl_ln_b"])

    x = x2d.reshape(T, B, E)
    # matches `return (x, attn, None, composition)` with composition=None
    # TODO(synk): pydec composition / incremental_state (KV cache) paths not modeled.
    return x, attn, None, None


# ------------------------------ parameter init ------------------------------ #

def _linear_params(key, out_dim, in_dim, scale=0.05):
    kw, _ = jax.random.split(key)
    return (scale * jax.random.normal(kw, (out_dim, in_dim), jnp.float32),
            jnp.zeros((out_dim,), jnp.float32))


def init_params(key, embed_dim, enc_embed_dim, ffn_dim):
    """PyTorch-convention (Out, In) weights, as in the nn.Module."""
    keys = jax.random.split(key, 12)
    sq_w, sq_b = _linear_params(keys[0], embed_dim, embed_dim)
    sk_w, sk_b = _linear_params(keys[1], embed_dim, embed_dim)
    sv_w, sv_b = _linear_params(keys[2], embed_dim, embed_dim)
    so_w, so_b = _linear_params(keys[3], embed_dim, embed_dim)
    eq_w, eq_b = _linear_params(keys[4], embed_dim, embed_dim)
    ek_w, ek_b = _linear_params(keys[5], embed_dim, enc_embed_dim)
    ev_w, ev_b = _linear_params(keys[6], embed_dim, enc_embed_dim)
    eo_w, eo_b = _linear_params(keys[7], embed_dim, embed_dim)
    f1_w, f1_b = _linear_params(keys[8], ffn_dim, embed_dim)
    f2_w, f2_b = _linear_params(keys[9], embed_dim, ffn_dim)
    ones = jnp.ones((embed_dim,), jnp.float32)
    zeros = jnp.zeros((embed_dim,), jnp.float32)
    return {
        "self_attn": dict(q_w=sq_w, q_b=sq_b, k_w=sk_w, k_b=sk_b,
                          v_w=sv_w, v_b=sv_b, o_w=so_w, o_b=so_b),
        "enc_attn": dict(q_w=eq_w, q_b=eq_b, k_w=ek_w, k_b=ek_b,
                         v_w=ev_w, v_b=ev_b, o_w=eo_w, o_b=eo_b),
        "sa_ln_w": ones, "sa_ln_b": zeros,
        "ea_ln_w": ones, "ea_ln_b": zeros,
        "fl_ln_w": ones, "fl_ln_b": zeros,
        "fc1_w": f1_w, "fc1_b": f1_b,
        "fc2_w": f2_w, "fc2_b": f2_b,
    }


def prepare_params(params, num_heads, embed_dim):
    """One-time host-side prep: transpose to (In, Out), fuse QKV/KV, fold q scaling."""
    head_dim = embed_dim // num_heads
    scaling = head_dim ** -0.5

    sa = params["self_attn"]
    qkv_w = jnp.concatenate(
        [sa["q_w"] * scaling, sa["k_w"], sa["v_w"]], axis=0).T      # (E, 3E)
    qkv_b = jnp.concatenate([sa["q_b"] * scaling, sa["k_b"], sa["v_b"]], axis=0)

    ea = params["enc_attn"]
    eq_w = (ea["q_w"] * scaling).T                                   # (E, E)
    eq_b = ea["q_b"] * scaling
    kv_w = jnp.concatenate([ea["k_w"], ea["v_w"]], axis=0).T         # (E_enc, 2E)
    kv_b = jnp.concatenate([ea["k_b"], ea["v_b"]], axis=0)

    return {
        "self_attn": dict(qkv_w=qkv_w, qkv_b=qkv_b,
                          o_w=sa["o_w"].T, o_b=sa["o_b"]),
        "enc_attn": dict(q_w=eq_w, q_b=eq_b, kv_w=kv_w, kv_b=kv_b,
                         o_w=ea["o_w"].T, o_b=ea["o_b"]),
        "sa_ln_w": params["sa_ln_w"], "sa_ln_b": params["sa_ln_b"],
        "ea_ln_w": params["ea_ln_w"], "ea_ln_b": params["ea_ln_b"],
        "fl_ln_w": params["fl_ln_w"], "fl_ln_b": params["fl_ln_b"],
        "fc1_w": params["fc1_w"].T, "fc1_b": params["fc1_b"],       # (E, F)
        "fc2_w": params["fc2_w"].T, "fc2_b": params["fc2_b"],       # (F, E)
    }


# ----------------------------------- main ----------------------------------- #

if __name__ == "__main__":
    T, B, E = 8, 2, 32          # decoder seq, batch, decoder embed_dim
    NH, FFN = 4, 64             # attention heads, ffn_embed_dim
    S_ENC, E_ENC = 12, 48       # encoder seq len, encoder embed_dim

    raw_params = init_params(jax.random.PRNGKey(0), E, E_ENC, FFN)
    params = prepare_params(raw_params, NH, E)

    kx, ke = jax.random.split(jax.random.PRNGKey(0), 2)
    x = jax.random.normal(kx, (T, B, E), jnp.float32)
    encoder_out = jax.random.normal(ke, (S_ENC, B, E_ENC), jnp.float32)

    # causal future mask (fairseq buffered_future_mask); large finite negative
    # instead of -inf so fully-masked rows could never NaN the softmax.
    row = jnp.arange(T)[:, None]
    col = jnp.arange(T)[None, :]
    self_attn_mask = jnp.where(col > row, -1e9, 0.0).astype(jnp.float32)

    fwd = jax.jit(functools.partial(decoder_layer_forward, num_heads=NH))
    out, attn, _, composition = fwd(params, x, encoder_out, self_attn_mask)
    out, attn = jax.block_until_ready((out, attn))

    assert out.shape == (T, B, E)
    assert attn.shape == (B, T, S_ENC)
    assert composition is None
    assert bool(jnp.all(jnp.isfinite(out)))
    assert bool(jnp.all(jnp.isfinite(attn)))
    print("KERNEL_OK")
</pallas_src>

<mosaic_0001>
module attributes {stable_mosaic.version = 11 : i64} {
  func.func @_linear_kernel(%arg0: i32, %arg1: memref<16x32xf32, #tpu.memory_space<vmem>>, %arg2: memref<32x96xf32, #tpu.memory_space<vmem>>, %arg3: memref<1x96xf32, #tpu.memory_space<vmem>>, %arg4: memref<16x96xf32, #tpu.memory_space<vmem>>) attributes {dimension_semantics = [#tpu.dimension_semantics<parallel>], iteration_bounds = array<i64: 1>, scalar_prefetch = 0 : i64, scratch_operands = 0 : i64, tpu.core_type = #tpu.core_type<tc>, window_params = [{transform_indices = @transform_0, window_bounds = array<i64: 16, 32>}, {pipeline_mode = #tpu.pipeline_mode<synchronous>, transform_indices = @transform_1, window_bounds = array<i64: 32, 96>}, {pipeline_mode = #tpu.pipeline_mode<synchronous>, transform_indices = @transform_2, window_bounds = array<i64: 1, 96>}, {transform_indices = @transform_3, window_bounds = array<i64: 16, 96>}]} {
    %c0 = arith.constant 0 : index
    %c0_0 = arith.constant 0 : index
    %0 = vector.load %arg1[%c0, %c0_0] : memref<16x32xf32, #tpu.memory_space<vmem>>, vector<16x32xf32>
    %c0_1 = arith.constant 0 : index
    %c0_2 = arith.constant 0 : index
    %1 = vector.load %arg2[%c0_1, %c0_2] : memref<32x96xf32, #tpu.memory_space<vmem>>, vector<32x96xf32>
    %cst = arith.constant dense<0.000000e+00> : vector<16x96xf32>
    %2 = tpu.matmul %0, %1, %cst {dimension_numbers = #tpu.dot_dimension_numbers<[1], [0], [0], [1], [0, 0, 1, 1], [], []>} : vector<16x32xf32>, vector<32x96xf32>, vector<16x96xf32> -> vector<16x96xf32>
    %c0_3 = arith.constant 0 : index
    %c0_4 = arith.constant 0 : index
    %3 = vector.load %arg3[%c0_3, %c0_4] : memref<1x96xf32, #tpu.memory_space<vmem>>, vector<1x96xf32>
    %4 = vector.broadcast %3 : vector<1x96xf32> to vector<16x96xf32>
    %5 = arith.addf %2, %4 : vector<16x96xf32>
    %c0_5 = arith.constant 0 : index
    %c0_6 = arith.constant 0 : index
    %6 = vector.load %arg4[%c0_5, %c0_6] : memref<16x96xf32, #tpu.memory_space<vmem>>, vector<16x96xf32>
    tpu.vector_store %arg4[%c0_5, %c0_6], %5 {strides = array<i32>} : memref<16x96xf32, #tpu.memory_space<vmem>>, vector<16x96xf32>,
    return
  }
  func.func @transform_0(%arg0: i32) -> (i32, i32) {
    %c0_i32 = arith.constant 0 : i32
    %c0_i32_0 = arith.constant 0 : i32
    return %arg0, %c0_i32 : i32, i32
  }
  func.func @transform_1(%arg0: i32) -> (i32, i32) {
    %c0_i32 = arith.constant 0 : i32
    %c0_i32_0 = arith.constant 0 : i32
    %c0_i32_1 = arith.constant 0 : i32
    return %c0_i32, %c0_i32_0 : i32, i32
  }
  func.func @transform_2(%arg0: i32) -> (i32, i32) {
    %c0_i32 = arith.constant 0 : i32
    %c0_i32_0 = arith.constant 0 : i32
    %c0_i32_1 = arith.constant 0 : i32
    return %c0_i32, %c0_i32_0 : i32, i32
  }
  func.func @transform_3(%arg0: i32) -> (i32, i32) {
    %c0_i32 = arith.constant 0 : i32
    %c0_i32_0 = arith.constant 0 : i32
    return %arg0, %c0_i32 : i32, i32
  }
}

module attributes {stable_mosaic.version = 11 : i64} {
  func.func @_self_attn_kernel(%arg0: i32, %arg1: i32, %arg2: memref<1x1x8x8xf32, #tpu.memory_space<vmem>>, %arg3: memref<1x1x8x8xf32, #tpu.memory_space<vmem>>, %arg4: memref<1x1x8x8xf32, #tpu.memory_space<vmem>>, %arg5: memref<8x8xf32, #tpu.memory_space<vmem>>, %arg6: memref<1x1x8x8xf32, #tpu.memory_space<vmem>>) attributes {dimension_semantics = [#tpu.dimension_semantics<parallel>, #tpu.dimension_semantics<parallel>], iteration_bounds = array<i64: 2, 4>, scalar_prefetch = 0 : i64, scratch_operands = 0 : i64, tpu.core_type = #tpu.core_type<tc>, window_params = [{transform_indices = @transform_0, window_bounds = array<i64: 1, 1, 8, 8>}, {transform_indices = @transform_1, window_bounds = array<i64: 1, 1, 8, 8>}, {transform_indices = @transform_2, window_bounds = array<i64: 1, 1, 8, 8>}, {pipeline_mode = #tpu.pipeline_mode<synchronous>, transform_indices = @transform_3, window_bounds = array<i64: 8, 8>}, {transform_indices = @transform_4, window_bounds = array<i64: 1, 1, 8, 8>}]} {
    %c0 = arith.constant 0 : index
    %c0_0 = arith.constant 0 : index
    %c0_1 = arith.constant 0 : index
    %c0_2 = arith.constant 0 : index
    %0 = vector.load %arg2[%c0, %c0_0, %c0_1, %c0_2] : memref<1x1x8x8xf32, #tpu.memory_space<vmem>>, vector<1x1x8x8xf32>
    %1 = vector.shape_cast %0 : vector<1x1x8x8xf32> to vector<8x8xf32>
    %c0_3 = arith.constant 0 : index
    %c0_4 = arith.constant 0 : index
    %c0_5 = arith.constant 0 : index
    %c0_6 = arith.constant 0 : index
    %2 = vector.load %arg3[%c0_3, %c0_4, %c0_5, %c0_6] : memref<1x1x8x8xf32, #tpu.memory_space<vmem>>, vector<1x1x8x8xf32>
    %3 = vector.shape_cast %2 : vector<1x1x8x8xf32> to vector<8x8xf32>
    %c0_7 = arith.constant 0 : index
    %c0_8 = arith.constant 0 : index
    %c0_9 = arith.constant 0 : index
    %c0_10 = arith.constant 0 : index
    %4 = vector.load %arg4[%c0_7, %c0_8, %c0_9, %c0_10] : memref<1x1x8x8xf32, #tpu.memory_space<vmem>>, vector<1x1x8x8xf32>
    %5 = vector.shape_cast %4 : vector<1x1x8x8xf32> to vector<8x8xf32>
    %cst = arith.constant dense<0.000000e+00> : vector<8x8xf32>
    %6 = tpu.matmul %1, %3, %cst {dimension_numbers = #tpu.dot_dimension_numbers<[1], [1], [0], [0], [0, 0, 1, 0], [], []>} : vector<8x8xf32>, vector<8x8xf32>, vector<8x8xf32> -> vector<8x8xf32>
    %c0_11 = arith.constant 0 : index
    %c0_12 = arith.constant 0 : index
    %7 = vector.load %arg5[%c0_11, %c0_12] : memref<8x8xf32, #tpu.memory_space<vmem>>, vector<8x8xf32>
    %8 = arith.addf %6, %7 : vector<8x8xf32>
    %cst_13 = arith.constant dense<0xFF800000> : vector<8xf32>
    %9 = vector.multi_reduction <maximumf>, %8, %cst_13 [1] : vector<8x8xf32> to vector<8xf32>
    %10 = vector.shape_cast %9 : vector<8xf32> to vector<8x1xf32>
    %11 = vector.broadcast %10 : vector<8x1xf32> to vector<8x8xf32>
    %12 = arith.subf %8, %11 : vector<8x8xf32>
    %13 = math.exp %12 : vector<8x8xf32>
    %cst_14 = arith.constant dense<0.000000e+00> : vector<8xf32>
    %14 = vector.multi_reduction <add>, %13, %cst_14 [1] : vector<8x8xf32> to vector<8xf32>
    %15 = vector.shape_cast %14 : vector<8xf32> to vector<8x1xf32>
    %16 = tpu.reciprocal %15 {approx = true} : vector<8x1xf32> -> vector<8x1xf32>
    %17 = vector.broadcast %16 : vector<8x1xf32> to vector<8x8xf32>
    %18 = arith.mulf %13, %17 : vector<8x8xf32>
    %cst_15 = arith.constant dense<0.000000e+00> : vector<8x8xf32>
    %19 = tpu.matmul %18, %5, %cst_15 {dimension_numbers = #tpu.dot_dimension_numbers<[1], [0], [0], [1], [0, 0, 1, 1], [], []>} : vector<8x8xf32>, vector<8x8xf32>, vector<8x8xf32> -> vector<8x8xf32>
    %c0_16 = arith.constant 0 : index
    %c0_17 = arith.constant 0 : index
    %c0_18 = arith.constant 0 : index
    %c0_19 = arith.constant 0 : index
    %20 = vector.load %arg6[%c0_16, %c0_17, %c0_18, %c0_19] : memref<1x1x8x8xf32, #tpu.memory_space<vmem>>, vector<1x1x8x8xf32>
    %21 = vector.shape_cast %20 : vector<1x1x8x8xf32> to vector<8x8xf32>
    %22 = vector.shape_cast %19 : vector<8x8xf32> to vector<1x1x8x8xf32>
    tpu.vector_store %arg6[%c0_16, %c0_17, %c0_18, %c0_19], %22 {strides = array<i32>} : memref<1x1x8x8xf32, #tpu.memory_space<vmem>>, vector<1x1x8x8xf32>,
    return
  }
  func.func @transform_0(%arg0: i32, %arg1: i32) -> (i32, i32, i32, i32) {
    %c0_i32 = arith.constant 0 : i32
    %c0_i32_0 = arith.constant 0 : i32
    %c0_i32_1 = arith.constant 0 : i32
    return %arg0, %arg1, %c0_i32, %c0_i32_0 : i32, i32, i32, i32
  }
  func.func @transform_1(%arg0: i32, %arg1: i32) -> (i32, i32, i32, i32) {
    %c0_i32 = arith.constant 0 : i32
    %c0_i32_0 = arith.constant 0 : i32
    %c0_i32_1 = arith.constant 0 : i32
    return %arg0, %arg1, %c0_i32, %c0_i32_0 : i32, i32, i32, i32
  }
  func.func @transform_2(%arg0: i32, %arg1: i32) -> (i32, i32, i32, i32) {
    %c0_i32 = arith.constant 0 : i32
    %c0_i32_0 = arith.constant 0 : i32
    %c0_i32_1 = arith.constant 0 : i32
    return %arg0, %arg1, %c0_i32, %c0_i32_0 : i32, i32, i32, i32
  }
  func.func @transform_3(%arg0: i32, %arg1: i32) -> (i32, i32) {
    %c0_i32 = arith.constant 0 : i32
    %c0_i32_0 = arith.constant 0 : i32
    %c0_i32_1 = arith.constant 0 : i32
    return %c0_i32, %c0_i32_0 : i32, i32
  }
  func.func @transform_4(%arg0: i32, %arg1: i32) -> (i32, i32, i32, i32) {
    %c0_i32 = arith.constant 0 : i32
    %c0_i32_0 = arith.constant 0 : i32
    %c0_i32_1 = arith.constant 0 : i32
    return %arg0, %arg1, %c0_i32, %c0_i32_0 : i32, i32, i32, i32
  }
}

module attributes {stable_mosaic.version = 11 : i64} {
  func.func @_linear_kernel(%arg0: i32, %arg1: memref<16x32xf32, #tpu.memory_space<vmem>>, %arg2: memref<32x32xf32, #tpu.memory_space<vmem>>, %arg3: memref<1x32xf32, #tpu.memory_space<vmem>>, %arg4: memref<16x32xf32, #tpu.memory_space<vmem>>) attributes {dimension_semantics = [#tpu.dimension_semantics<parallel>], iteration_bounds = array<i64: 1>, scalar_prefetch = 0 : i64, scratch_operands = 0 : i64, tpu.core_type = #tpu.core_type<tc>, window_params = [{transform_indices = @transform_0, window_bounds = array<i64: 16, 32>}, {pipeline_mode = #tpu.pipeline_mode<synchronous>, transform_indices = @transform_1, window_bounds = array<i64: 32, 32>}, {pipeline_mode = #tpu.pipeline_mode<synchronous>, transform_indices = @transform_2, window_bounds = array<i64: 1, 32>}, {transform_indices = @transform_3, window_bounds = array<i64: 16, 32>}]} {
    %c0 = arith.constant 0 : index
    %c0_0 = arith.constant 0 : index
    %0 = vector.load %arg1[%c0, %c0_0] : memref<16x32xf32, #tpu.memory_space<vmem>>, vector<16x32xf32>
    %c0_1 = arith.constant 0 : index
    %c0_2 = arith.constant 0 : index
    %1 = vector.load %arg2[%c0_1, %c0_2] : memref<32x32xf32, #tpu.memory_space<vmem>>, vector<32x32xf32>
    %cst = arith.constant dense<0.000000e+00> : vector<16x32xf32>
    %2 = tpu.matmul %0, %1, %cst {dimension_numbers = #tpu.dot_dimension_numbers<[1], [0], [0], [1], [0, 0, 1, 1], [], []>} : vector<16x32xf32>, vector<32x32xf32>, vector<16x32xf32> -> vector<16x32xf32>
    %c0_3 = arith.constant 0 : index
    %c0_4 = arith.constant 0 : index
    %3 = vector.load %arg3[%c0_3, %c0_4] : memref<1x32xf32, #tpu.memory_space<vmem>>, vector<1x32xf32>
    %4 = vector.broadcast %3 : vector<1x32xf32> to vector<16x32xf32>
    %5 = arith.addf %2, %4 : vector<16x32xf32>
    %c0_5 = arith.constant 0 : index
    %c0_6 = arith.constant 0 : index
    %6 = vector.load %arg4[%c0_5, %c0_6] : memref<16x32xf32, #tpu.memory_space<vmem>>, vector<16x32xf32>
    tpu.vector_store %arg4[%c0_5, %c0_6], %5 {strides = array<i32>} : memref<16x32xf32, #tpu.memory_space<vmem>>, vector<16x32xf32>,
    return
  }
  func.func @transform_0(%arg0: i32) -> (i32, i32) {
    %c0_i32 = arith.constant 0 : i32
    %c0_i32_0 = arith.constant 0 : i32
    return %arg0, %c0_i32 : i32, i32
  }
  func.func @transform_1(%arg0: i32) -> (i32, i32) {
    %c0_i32 = arith.constant 0 : i32
    %c0_i32_0 = arith.constant 0 : i32
    %c0_i32_1 = arith.constant 0 : i32
    return %c0_i32, %c0_i32_0 : i32, i32
  }
  func.func @transform_2(%arg0: i32) -> (i32, i32) {
    %c0_i32 = arith.constant 0 : i32
    %c0_i32_0 = arith.constant 0 : i32
    %c0_i32_1 = arith.constant 0 : i32
    return %c0_i32, %c0_i32_0 : i32, i32
  }
  func.func @transform_3(%arg0: i32) -> (i32, i32) {
    %c0_i32 = arith.constant 0 : i32
    %c0_i32_0 = arith.constant 0 : i32
    return %arg0, %c0_i32 : i32, i32
  }
}

module attributes {stable_mosaic.version = 11 : i64} {
  func.func @_outproj_add_ln_kernel(%arg0: i32, %arg1: memref<16x32xf32, #tpu.memory_space<vmem>>, %arg2: memref<16x32xf32, #tpu.memory_space<vmem>>, %arg3: memref<32x32xf32, #tpu.memory_space<vmem>>, %arg4: memref<1x32xf32, #tpu.memory_space<vmem>>, %arg5: memref<1x32xf32, #tpu.memory_space<vmem>>, %arg6: memref<1x32xf32, #tpu.memory_space<vmem>>, %arg7: memref<16x32xf32, #tpu.memory_space<vmem>>) attributes {dimension_semantics = [#tpu.dimension_semantics<parallel>], iteration_bounds = array<i64: 1>, scalar_prefetch = 0 : i64, scratch_operands = 0 : i64, tpu.core_type = #tpu.core_type<tc>, window_params = [{transform_indices = @transform_0, window_bounds = array<i64: 16, 32>}, {transform_indices = @transform_1, window_bounds = array<i64: 16, 32>}, {pipeline_mode = #tpu.pipeline_mode<synchronous>, transform_indices = @transform_2, window_bounds = array<i64: 32, 32>}, {pipeline_mode = #tpu.pipeline_mode<synchronous>, transform_indices = @transform_3, window_bounds = array<i64: 1, 32>}, {pipeline_mode = #tpu.pipeline_mode<synchronous>, transform_indices = @transform_4, window_bounds = array<i64: 1, 32>}, {pipeline_mode = #tpu.pipeline_mode<synchronous>, transform_indices = @transform_5, window_bounds = array<i64: 1, 32>}, {transform_indices = @transform_6, window_bounds = array<i64: 16, 32>}]} {
    %c0 = arith.constant 0 : index
    %c0_0 = arith.constant 0 : index
    %0 = vector.load %arg1[%c0, %c0_0] : memref<16x32xf32, #tpu.memory_space<vmem>>, vector<16x32xf32>
    %c0_1 = arith.constant 0 : index
    %c0_2 = arith.constant 0 : index
    %1 = vector.load %arg3[%c0_1, %c0_2] : memref<32x32xf32, #tpu.memory_space<vmem>>, vector<32x32xf32>
    %cst = arith.constant dense<0.000000e+00> : vector<16x32xf32>
    %2 = tpu.matmul %0, %1, %cst {dimension_numbers = #tpu.dot_dimension_numbers<[1], [0], [0], [1], [0, 0, 1, 1], [], []>} : vector<16x32xf32>, vector<32x32xf32>, vector<16x32xf32> -> vector<16x32xf32>
    %c0_3 = arith.constant 0 : index
    %c0_4 = arith.constant 0 : index
    %3 = vector.load %arg4[%c0_3, %c0_4] : memref<1x32xf32, #tpu.memory_space<vmem>>, vector<1x32xf32>
    %4 = vector.broadcast %3 : vector<1x32xf32> to vector<16x32xf32>
    %5 = arith.addf %2, %4 : vector<16x32xf32>
    %c0_5 = arith.constant 0 : index
    %c0_6 = arith.constant 0 : index
    %6 = vector.load %arg2[%c0_5, %c0_6] : memref<16x32xf32, #tpu.memory_space<vmem>>, vector<16x32xf32>
    %7 = arith.addf %5, %6 : vector<16x32xf32>
    %cst_7 = arith.constant dense<0.000000e+00> : vector<16xf32>
    %8 = vector.multi_reduction <add>, %7, %cst_7 [1] : vector<16x32xf32> to vector<16xf32>
    %9 = vector.shape_cast %8 : vector<16xf32> to vector<16x1xf32>
    %cst_8 = arith.constant 3.200000e+01 : f32
    %10 = vector.broadcast %cst_8 : f32 to vector<16x1xf32>
    %11 = arith.divf %9, %10 : vector<16x1xf32>
    %12 = vector.broadcast %11 : vector<16x1xf32> to vector<16x32xf32>
    %13 = arith.subf %7, %12 : vector<16x32xf32>
    %14 = arith.mulf %13, %13 : vector<16x32xf32>
    %cst_9 = arith.constant dense<0.000000e+00> : vector<16xf32>
    %15 = vector.multi_reduction <add>, %14, %cst_9 [1] : vector<16x32xf32> to vector<16xf32>
    %16 = vector.shape_cast %15 : vector<16xf32> to vector<16x1xf32>
    %cst_10 = arith.constant 3.200000e+01 : f32
    %17 = vector.broadcast %cst_10 : f32 to vector<16x1xf32>
    %18 = arith.divf %16, %17 : vector<16x1xf32>
    %19 = vector.broadcast %11 : vector<16x1xf32> to vector<16x32xf32>
    %20 = arith.subf %7, %19 : vector<16x32xf32>
    %cst_11 = arith.constant 9.99999974E-6 : f32
    %21 = vector.broadcast %cst_11 : f32 to vector<16x1xf32>
    %22 = arith.addf %18, %21 : vector<16x1xf32>
    %23 = math.rsqrt %22 : vector<16x1xf32>
    %24 = vector.broadcast %23 : vector<16x1xf32> to vector<16x32xf32>
    %25 = arith.mulf %20, %24 : vector<16x32xf32>
    %c0_12 = arith.constant 0 : index
    %c0_13 = arith.constant 0 : index
    %26 = vector.load %arg5[%c0_12, %c0_13] : memref<1x32xf32, #tpu.memory_space<vmem>>, vector<1x32xf32>
    %27 = vector.broadcast %26 : vector<1x32xf32> to vector<16x32xf32>
    %28 = arith.mulf %25, %27 : vector<16x32xf32>
    %c0_14 = arith.constant 0 : index
    %c0_15 = arith.constant 0 : index
    %29 = vector.load %arg6[%c0_14, %c0_15] : memref<1x32xf32, #tpu.memory_space<vmem>>, vector<1x32xf32>
    %30 = vector.broadcast %29 : vector<1x32xf32> to vector<16x32xf32>
    %31 = arith.addf %28, %30 : vector<16x32xf32>
    %c0_16 = arith.constant 0 : index
    %c0_17 = arith.constant 0 : index
    %32 = vector.load %arg7[%c0_16, %c0_17] : memref<16x32xf32, #tpu.memory_space<vmem>>, vector<16x32xf32>
    tpu.vector_store %arg7[%c0_16, %c0_17], %31 {strides = array<i32>} : memref<16x32xf32, #tpu.memory_space<vmem>>, vector<16x32xf32>,
    return
  }
  func.func @transform_0(%arg0: i32) -> (i32, i32) {
    %c0_i32 = arith.constant 0 : i32
    %c0_i32_0 = arith.constant 0 : i32
    return %arg0, %c0_i32 : i32, i32
  }
  func.func @transform_1(%arg0: i32) -> (i32, i32) {
    %c0_i32 = arith.constant 0 : i32
    %c0_i32_0 = arith.constant 0 : i32
    return %arg0, %c0_i32 : i32, i32
  }
  func.func @transform_2(%arg0: i32) -> (i32, i32) {
    %c0_i32 = arith.constant 0 : i32
    %c0_i32_0 = arith.constant 0 : i32
    %c0_i32_1 = arith.constant 0 : i32
    return %c0_i32, %c0_i32_0 : i32, i32
  }
  func.func @transform_3(%arg0: i32) -> (i32, i32) {
    %c0_i32 = arith.constant 0 : i32
    %c0_i32_0 = arith.constant 0 : i32
    %c0_i32_1 = arith.constant 0 : i32
    return %c0_i32, %c0_i32_0 : i32, i32
  }
  func.func @transform_4(%arg0: i32) -> (i32, i32) {
    %c0_i32 = arith.constant 0 : i32
    %c0_i32_0 = arith.constant 0 : i32
    %c0_i32_1 = arith.constant 0 : i32
    return %c0_i32, %c0_i32_0 : i32, i32
  }
  func.func @transform_5(%arg0: i32) -> (i32, i32) {
    %c0_i32 = arith.constant 0 : i32
    %c0_i32_0 = arith.constant 0 : i32
    %c0_i32_1 = arith.constant 0 : i32
    return %c0_i32, %c0_i32_0 : i32, i32
  }
  func.func @transform_6(%arg0: i32) -> (i32, i32) {
    %c0_i32 = arith.constant 0 : i32
    %c0_i32_0 = arith.constant 0 : i32
    return %arg0, %c0_i32 : i32, i32
  }
}

module attributes {stable_mosaic.version = 11 : i64} {
  func.func @_linear_kernel(%arg0: i32, %arg1: memref<24x48xf32, #tpu.memory_space<vmem>>, %arg2: memref<48x64xf32, #tpu.memory_space<vmem>>, %arg3: memref<1x64xf32, #tpu.memory_space<vmem>>, %arg4: memref<24x64xf32, #tpu.memory_space<vmem>>) attributes {dimension_semantics = [#tpu.dimension_semantics<parallel>], iteration_bounds = array<i64: 1>, scalar_prefetch = 0 : i64, scratch_operands = 0 : i64, tpu.core_type = #tpu.core_type<tc>, window_params = [{transform_indices = @transform_0, window_bounds = array<i64: 24, 48>}, {pipeline_mode = #tpu.pipeline_mode<synchronous>, transform_indices = @transform_1, window_bounds = array<i64: 48, 64>}, {pipeline_mode = #tpu.pipeline_mode<synchronous>, transform_indices = @transform_2, window_bounds = array<i64: 1, 64>}, {transform_indices = @transform_3, window_bounds = array<i64: 24, 64>}]} {
    %c0 = arith.constant 0 : index
    %c0_0 = arith.constant 0 : index
    %0 = vector.load %arg1[%c0, %c0_0] : memref<24x48xf32, #tpu.memory_space<vmem>>, vector<24x48xf32>
    %c0_1 = arith.constant 0 : index
    %c0_2 = arith.constant 0 : index
    %1 = vector.load %arg2[%c0_1, %c0_2] : memref<48x64xf32, #tpu.memory_space<vmem>>, vector<48x64xf32>
    %cst = arith.constant dense<0.000000e+00> : vector<24x64xf32>
    %2 = tpu.matmul %0, %1, %cst {dimension_numbers = #tpu.dot_dimension_numbers<[1], [0], [0], [1], [0, 0, 1, 1], [], []>} : vector<24x48xf32>, vector<48x64xf32>, vector<24x64xf32> -> vector<24x64xf32>
    %c0_3 = arith.constant 0 : index
    %c0_4 = arith.constant 0 : index
    %3 = vector.load %arg3[%c0_3, %c0_4] : memref<1x64xf32, #tpu.memory_space<vmem>>, vector<1x64xf32>
    %4 = vector.broadcast %3 : vector<1x64xf32> to vector<24x64xf32>
    %5 = arith.addf %2, %4 : vector<24x64xf32>
    %c0_5 = arith.constant 0 : index
    %c0_6 = arith.constant 0 : index
    %6 = vector.load %arg4[%c0_5, %c0_6] : memref<24x64xf32, #tpu.memory_space<vmem>>, vector<24x64xf32>
    tpu.vector_store %arg4[%c0_5, %c0_6], %5 {strides = array<i32>} : memref<24x64xf32, #tpu.memory_space<vmem>>, vector<24x64xf32>,
    return
  }
  func.func @transform_0(%arg0: i32) -> (i32, i32) {
    %c0_i32 = arith.constant 0 : i32
    %c0_i32_0 = arith.constant 0 : i32
    return %arg0, %c0_i32 : i32, i32
  }
  func.func @transform_1(%arg0: i32) -> (i32, i32) {
    %c0_i32 = arith.constant 0 : i32
    %c0_i32_0 = arith.constant 0 : i32
    %c0_i32_1 = arith.constant 0 : i32
    return %c0_i32, %c0_i32_0 : i32, i32
  }
  func.func @transform_2(%arg0: i32) -> (i32, i32) {
    %c0_i32 = arith.constant 0 : i32
    %c0_i32_0 = arith.constant 0 : i32
    %c0_i32_1 = arith.constant 0 : i32
    return %c0_i32, %c0_i32_0 : i32, i32
  }
  func.func @transform_3(%arg0: i32) -> (i32, i32) {
    %c0_i32 = arith.constant 0 : i32
    %c0_i32_0 = arith.constant 0 : i32
    return %arg0, %c0_i32 : i32, i32
  }
}

module attributes {stable_mosaic.version = 11 : i64} {
  func.func @_cross_attn_kernel(%arg0: i32, %arg1: i32, %arg2: memref<1x1x8x8xf32, #tpu.memory_space<vmem>>, %arg3: memref<1x1x12x8xf32, #tpu.memory_space<vmem>>, %arg4: memref<1x1x12x8xf32, #tpu.memory_space<vmem>>, %arg5: memref<1x1x8x8xf32, #tpu.memory_space<vmem>>, %arg6: memref<1x8x12xf32, #tpu.memory_space<vmem>>) attributes {dimension_semantics = [#tpu.dimension_semantics<parallel>, #tpu.dimension_semantics<arbitrary>], iteration_bounds = array<i64: 2, 4>, scalar_prefetch = 0 : i64, scratch_operands = 0 : i64, tpu.core_type = #tpu.core_type<tc>, window_params = [{transform_indices = @transform_0, window_bounds = array<i64: 1, 1, 8, 8>}, {transform_indices = @transform_1, window_bounds = array<i64: 1, 1, 12, 8>}, {transform_indices = @transform_2, window_bounds = array<i64: 1, 1, 12, 8>}, {transform_indices = @transform_3, window_bounds = array<i64: 1, 1, 8, 8>}, {transform_indices = @transform_4, window_bounds = array<i64: 1, 8, 12>}]} {
    %c0_i32 = arith.constant 0 : i32
    %0 = arith.cmpi eq, %arg1, %c0_i32 : i32
    %1 = arith.extui %0 : i1 to i32
    %c0_i32_0 = arith.constant 0 : i32
    %2 = arith.cmpi ne, %1, %c0_i32_0 : i32
    scf.if %2 {
      %cst_26 = arith.constant 0.000000e+00 : f32
      %30 = vector.broadcast %cst_26 : f32 to vector<1x8x12xf32>
      %c0_27 = arith.constant 0 : index
      %c0_28 = arith.constant 0 : index
      %c0_29 = arith.constant 0 : index
      %31 = vector.load %arg6[%c0_27, %c0_28, %c0_29] : memref<1x8x12xf32, #tpu.memory_space<vmem>>, vector<1x8x12xf32>
      tpu.vector_store %arg6[%c0_27, %c0_28, %c0_29], %30 {strides = array<i32>} : memref<1x8x12xf32, #tpu.memory_space<vmem>>, vector<1x8x12xf32>,
    } else {
    }
    %c0 = arith.constant 0 : index
    %c0_1 = arith.constant 0 : index
    %c0_2 = arith.constant 0 : index
    %c0_3 = arith.constant 0 : index
    %3 = vector.load %arg2[%c0, %c0_1, %c0_2, %c0_3] : memref<1x1x8x8xf32, #tpu.memory_space<vmem>>, vector<1x1x8x8xf32>
    %4 = vector.shape_cast %3 : vector<1x1x8x8xf32> to vector<8x8xf32>
    %c0_4 = arith.constant 0 : index
    %c0_5 = arith.constant 0 : index
    %c0_6 = arith.constant 0 : index
    %c0_7 = arith.constant 0 : index
    %5 = vector.load %arg3[%c0_4, %c0_5, %c0_6, %c0_7] : memref<1x1x12x8xf32, #tpu.memory_space<vmem>>, vector<1x1x12x8xf32>
    %6 = vector.shape_cast %5 : vector<1x1x12x8xf32> to vector<12x8xf32>
    %c0_8 = arith.constant 0 : index
    %c0_9 = arith.constant 0 : index
    %c0_10 = arith.constant 0 : index
    %c0_11 = arith.constant 0 : index
    %7 = vector.load %arg4[%c0_8, %c0_9, %c0_10, %c0_11] : memref<1x1x12x8xf32, #tpu.memory_space<vmem>>, vector<1x1x12x8xf32>
    %8 = vector.shape_cast %7 : vector<1x1x12x8xf32> to vector<12x8xf32>
    %cst = arith.constant dense<0.000000e+00> : vector<8x12xf32>
    %9 = tpu.matmul %4, %6, %cst {dimension_numbers = #tpu.dot_dimension_numbers<[1], [1], [0], [0], [0, 0, 1, 0], [], []>} : vector<8x8xf32>, vector<12x8xf32>, vector<8x12xf32> -> vector<8x12xf32>
    %cst_12 = arith.constant dense<0xFF800000> : vector<8xf32>
    %10 = vector.multi_reduction <maximumf>, %9, %cst_12 [1] : vector<8x12xf32> to vector<8xf32>
    %11 = vector.shape_cast %10 : vector<8xf32> to vector<8x1xf32>
    %12 = vector.broadcast %11 : vector<8x1xf32> to vector<8x12xf32>
    %13 = arith.subf %9, %12 : vector<8x12xf32>
    %14 = math.exp %13 : vector<8x12xf32>
    %cst_13 = arith.constant dense<0.000000e+00> : vector<8xf32>
    %15 = vector.multi_reduction <add>, %14, %cst_13 [1] : vector<8x12xf32> to vector<8xf32>
    %16 = vector.shape_cast %15 : vector<8xf32> to vector<8x1xf32>
    %17 = tpu.reciprocal %16 {approx = true} : vector<8x1xf32> -> vector<8x1xf32>
    %18 = vector.broadcast %17 : vector<8x1xf32> to vector<8x12xf32>
    %19 = arith.mulf %14, %18 : vector<8x12xf32>
    %c0_14 = arith.constant 0 : index
    %c0_15 = arith.constant 0 : index
    %c0_16 = arith.constant 0 : index
    %20 = vector.load %arg6[%c0_14, %c0_15, %c0_16] : memref<1x8x12xf32, #tpu.memory_space<vmem>>, vector<1x8x12xf32>
    %cst_17 = arith.constant 2.500000e-01 : f32
    %21 = vector.broadcast %cst_17 : f32 to vector<8x12xf32>
    %22 = arith.mulf %19, %21 : vector<8x12xf32>
    %23 = vector.shape_cast %22 : vector<8x12xf32> to vector<1x8x12xf32>
    %24 = arith.addf %20, %23 : vector<1x8x12xf32>
    %c0_18 = arith.constant 0 : index
    %c0_19 = arith.constant 0 : index
    %c0_20 = arith.constant 0 : index
    %25 = vector.load %arg6[%c0_18, %c0_19, %c0_20] : memref<1x8x12xf32, #tpu.memory_space<vmem>>, vector<1x8x12xf32>
    tpu.vector_store %arg6[%c0_18, %c0_19, %c0_20], %24 {strides = array<i32>} : memref<1x8x12xf32, #tpu.memory_space<vmem>>, vector<1x8x12xf32>,
    %cst_21 = arith.constant dense<0.000000e+00> : vector<8x8xf32>
    %26 = tpu.matmul %19, %8, %cst_21 {dimension_numbers = #tpu.dot_dimension_numbers<[1], [0], [0], [1], [0, 0, 1, 1], [], []>} : vector<8x12xf32>, vector<12x8xf32>, vector<8x8xf32> -> vector<8x8xf32>
    %c0_22 = arith.constant 0 : index
    %c0_23 = arith.constant 0 : index
    %c0_24 = arith.constant 0 : index
    %c0_25 = arith.constant 0 : index
    %27 = vector.load %arg5[%c0_22, %c0_23, %c0_24, %c0_25] : memref<1x1x8x8xf32, #tpu.memory_space<vmem>>, vector<1x1x8x8xf32>
    %28 = vector.shape_cast %27 : vector<1x1x8x8xf32> to vector<8x8xf32>
    %29 = vector.shape_cast %26 : vector<8x8xf32> to vector<1x1x8x8xf32>
    tpu.vector_store %arg5[%c0_22, %c0_23, %c0_24, %c0_25], %29 {strides = array<i32>} : memref<1x1x8x8xf32, #tpu.memory_space<vmem>>, vector<1x1x8x8xf32>,
    return
  }
  func.func @transform_0(%arg0: i32, %arg1: i32) -> (i32, i32, i32, i32) {
    %c0_i32 = arith.constant 0 : i32
    %c0_i32_0 = arith.constant 0 : i32
    %c0_i32_1 = arith.constant 0 : i32
    return %arg0, %arg1, %c0_i32, %c0_i32_0 : i32, i32, i32, i32
  }
  func.func @transform_1(%arg0: i32, %arg1: i32) -> (i32, i32, i32, i32) {
    %c0_i32 = arith.constant 0 : i32
    %c0_i32_0 = arith.constant 0 : i32
    %c0_i32_1 = arith.constant 0 : i32
    return %arg0, %arg1, %c0_i32, %c0_i32_0 : i32, i32, i32, i32
  }
  func.func @transform_2(%arg0: i32, %arg1: i32) -> (i32, i32, i32, i32) {
    %c0_i32 = arith.constant 0 : i32
    %c0_i32_0 = arith.constant 0 : i32
    %c0_i32_1 = arith.constant 0 : i32
    return %arg0, %arg1, %c0_i32, %c0_i32_0 : i32, i32, i32, i32
  }
  func.func @transform_3(%arg0: i32, %arg1: i32) -> (i32, i32, i32, i32) {
    %c0_i32 = arith.constant 0 : i32
    %c0_i32_0 = arith.constant 0 : i32
    %c0_i32_1 = arith.constant 0 : i32
    return %arg0, %arg1, %c0_i32, %c0_i32_0 : i32, i32, i32, i32
  }
  func.func @transform_4(%arg0: i32, %arg1: i32) -> (i32, i32, i32) {
    %c0_i32 = arith.constant 0 : i32
    %c0_i32_0 = arith.constant 0 : i32
    %c0_i32_1 = arith.constant 0 : i32
    return %arg0, %c0_i32, %c0_i32_0 : i32, i32, i32
  }
}

module attributes {stable_mosaic.version = 11 : i64} {
  func.func @_ffn_add_ln_kernel(%arg0: i32, %arg1: memref<16x32xf32, #tpu.memory_space<vmem>>, %arg2: memref<16x32xf32, #tpu.memory_space<vmem>>, %arg3: memref<32x64xf32, #tpu.memory_space<vmem>>, %arg4: memref<1x64xf32, #tpu.memory_space<vmem>>, %arg5: memref<64x32xf32, #tpu.memory_space<vmem>>, %arg6: memref<1x32xf32, #tpu.memory_space<vmem>>, %arg7: memref<1x32xf32, #tpu.memory_space<vmem>>, %arg8: memref<1x32xf32, #tpu.memory_space<vmem>>, %arg9: memref<16x32xf32, #tpu.memory_space<vmem>>) attributes {dimension_semantics = [#tpu.dimension_semantics<parallel>], iteration_bounds = array<i64: 1>, scalar_prefetch = 0 : i64, scratch_operands = 0 : i64, tpu.core_type = #tpu.core_type<tc>, window_params = [{transform_indices = @transform_0, window_bounds = array<i64: 16, 32>}, {transform_indices = @transform_1, window_bounds = array<i64: 16, 32>}, {pipeline_mode = #tpu.pipeline_mode<synchronous>, transform_indices = @transform_2, window_bounds = array<i64: 32, 64>}, {pipeline_mode = #tpu.pipeline_mode<synchronous>, transform_indices = @transform_3, window_bounds = array<i64: 1, 64>}, {pipeline_mode = #tpu.pipeline_mode<synchronous>, transform_indices = @transform_4, window_bounds = array<i64: 64, 32>}, {pipeline_mode = #tpu.pipeline_mode<synchronous>, transform_indices = @transform_5, window_bounds = array<i64: 1, 32>}, {pipeline_mode = #tpu.pipeline_mode<synchronous>, transform_indices = @transform_6, window_bounds = array<i64: 1, 32>}, {pipeline_mode = #tpu.pipeline_mode<synchronous>, transform_indices = @transform_7, window_bounds = array<i64: 1, 32>}, {transform_indices = @transform_8, window_bounds = array<i64: 16, 32>}]} {
    %c0 = arith.constant 0 : index
    %c0_0 = arith.constant 0 : index
    %0 = vector.load %arg1[%c0, %c0_0] : memref<16x32xf32, #tpu.memory_space<vmem>>, vector<16x32xf32>
    %c0_1 = arith.constant 0 : index
    %c0_2 = arith.constant 0 : index
    %1 = vector.load %arg3[%c0_1, %c0_2] : memref<32x64xf32, #tpu.memory_space<vmem>>, vector<32x64xf32>
    %cst = arith.constant dense<0.000000e+00> : vector<16x64xf32>
    %2 = tpu.matmul %0, %1, %cst {dimension_numbers = #tpu.dot_dimension_numbers<[1], [0], [0], [1], [0, 0, 1, 1], [], []>} : vector<16x32xf32>, vector<32x64xf32>, vector<16x64xf32> -> vector<16x64xf32>
    %c0_3 = arith.constant 0 : index
    %c0_4 = arith.constant 0 : index
    %3 = vector.load %arg4[%c0_3, %c0_4] : memref<1x64xf32, #tpu.memory_space<vmem>>, vector<1x64xf32>
    %4 = vector.broadcast %3 : vector<1x64xf32> to vector<16x64xf32>
    %5 = arith.addf %2, %4 : vector<16x64xf32>
    %cst_5 = arith.constant 0.000000e+00 : f32
    %6 = vector.broadcast %cst_5 : f32 to vector<16x64xf32>
    %7 = arith.maximumf %5, %6 : vector<16x64xf32>
    %c0_6 = arith.constant 0 : index
    %c0_7 = arith.constant 0 : index
    %8 = vector.load %arg5[%c0_6, %c0_7] : memref<64x32xf32, #tpu.memory_space<vmem>>, vector<64x32xf32>
    %cst_8 = arith.constant dense<0.000000e+00> : vector<16x32xf32>
    %9 = tpu.matmul %7, %8, %cst_8 {dimension_numbers = #tpu.dot_dimension_numbers<[1], [0], [0], [1], [0, 0, 1, 1], [], []>} : vector<16x64xf32>, vector<64x32xf32>, vector<16x32xf32> -> vector<16x32xf32>
    %c0_9 = arith.constant 0 : index
    %c0_10 = arith.constant 0 : index
    %10 = vector.load %arg6[%c0_9, %c0_10] : memref<1x32xf32, #tpu.memory_space<vmem>>, vector<1x32xf32>
    %11 = vector.broadcast %10 : vector<1x32xf32> to vector<16x32xf32>
    %12 = arith.addf %9, %11 : vector<16x32xf32>
    %c0_11 = arith.constant 0 : index
    %c0_12 = arith.constant 0 : index
    %13 = vector.load %arg2[%c0_11, %c0_12] : memref<16x32xf32, #tpu.memory_space<vmem>>, vector<16x32xf32>
    %14 = arith.addf %12, %13 : vector<16x32xf32>
    %cst_13 = arith.constant dense<0.000000e+00> : vector<16xf32>
    %15 = vector.multi_reduction <add>, %14, %cst_13 [1] : vector<16x32xf32> to vector<16xf32>
    %16 = vector.shape_cast %15 : vector<16xf32> to vector<16x1xf32>
    %cst_14 = arith.constant 3.200000e+01 : f32
    %17 = vector.broadcast %cst_14 : f32 to vector<16x1xf32>
    %18 = arith.divf %16, %17 : vector<16x1xf32>
    %19 = vector.broadcast %18 : vector<16x1xf32> to vector<16x32xf32>
    %20 = arith.subf %14, %19 : vector<16x32xf32>
    %21 = arith.mulf %20, %20 : vector<16x32xf32>
    %cst_15 = arith.constant dense<0.000000e+00> : vector<16xf32>
    %22 = vector.multi_reduction <add>, %21, %cst_15 [1] : vector<16x32xf32> to vector<16xf32>
    %23 = vector.shape_cast %22 : vector<16xf32> to vector<16x1xf32>
    %cst_16 = arith.constant 3.200000e+01 : f32
    %24 = vector.broadcast %cst_16 : f32 to vector<16x1xf32>
    %25 = arith.divf %23, %24 : vector<16x1xf32>
    %26 = vector.broadcast %18 : vector<16x1xf32> to vector<16x32xf32>
    %27 = arith.subf %14, %26 : vector<16x32xf32>
    %cst_17 = arith.constant 9.99999974E-6 : f32
    %28 = vector.broadcast %cst_17 : f32 to vector<16x1xf32>
    %29 = arith.addf %25, %28 : vector<16x1xf32>
    %30 = math.rsqrt %29 : vector<16x1xf32>
    %31 = vector.broadcast %30 : vector<16x1xf32> to vector<16x32xf32>
    %32 = arith.mulf %27, %31 : vector<16x32xf32>
    %c0_18 = arith.constant 0 : index
    %c0_19 = arith.constant 0 : index
    %33 = vector.load %arg7[%c0_18, %c0_19] : memref<1x32xf32, #tpu.memory_space<vmem>>, vector<1x32xf32>
    %34 = vector.broadcast %33 : vector<1x32xf32> to vector<16x32xf32>
    %35 = arith.mulf %32, %34 : vector<16x32xf32>
    %c0_20 = arith.constant 0 : index
    %c0_21 = arith.constant 0 : index
    %36 = vector.load %arg8[%c0_20, %c0_21] : memref<1x32xf32, #tpu.memory_space<vmem>>, vector<1x32xf32>
    %37 = vector.broadcast %36 : vector<1x32xf32> to vector<16x32xf32>
    %38 = arith.addf %35, %37 : vector<16x32xf32>
    %c0_22 = arith.constant 0 : index
    %c0_23 = arith.constant 0 : index
    %39 = vector.load %arg9[%c0_22, %c0_23] : memref<16x32xf32, #tpu.memory_space<vmem>>, vector<16x32xf32>
    tpu.vector_store %arg9[%c0_22, %c0_23], %38 {strides = array<i32>} : memref<16x32xf32, #tpu.memory_space<vmem>>, vector<16x32xf32>,
    return
  }
  func.func @transform_0(%arg0: i32) -> (i32, i32) {
    %c0_i32 = arith.constant 0 : i32
    %c0_i32_0 = arith.constant 0 : i32
    return %arg0, %c0_i32 : i32, i32
  }
  func.func @transform_1(%arg0: i32) -> (i32, i32) {
    %c0_i32 = arith.constant 0 : i32
    %c0_i32_0 = arith.constant 0 : i32
    return %arg0, %c0_i32 : i32, i32
  }
  func.func @transform_2(%arg0: i32) -> (i32, i32) {
    %c0_i32 = arith.constant 0 : i32
    %c0_i32_0 = arith.constant 0 : i32
    %c0_i32_1 = arith.constant 0 : i32
    return %c0_i32, %c0_i32_0 : i32, i32
  }
  func.func @transform_3(%arg0: i32) -> (i32, i32) {
    %c0_i32 = arith.constant 0 : i32
    %c0_i32_0 = arith.constant 0 : i32
    %c0_i32_1 = arith.constant 0 : i32
    return %c0_i32, %c0_i32_0 : i32, i32
  }
  func.func @transform_4(%arg0: i32) -> (i32, i32) {
    %c0_i32 = arith.constant 0 : i32
    %c0_i32_0 = arith.constant 0 : i32
    %c0_i32_1 = arith.constant 0 : i32
    return %c0_i32, %c0_i32_0 : i32, i32
  }
  func.func @transform_5(%arg0: i32) -> (i32, i32) {
    %c0_i32 = arith.constant 0 : i32
    %c0_i32_0 = arith.constant 0 : i32
    %c0_i32_1 = arith.constant 0 : i32
    return %c0_i32, %c0_i32_0 : i32, i32
  }
  func.func @transform_6(%arg0: i32) -> (i32, i32) {
    %c0_i32 = arith.constant 0 : i32
    %c0_i32_0 = arith.constant 0 : i32
    %c0_i32_1 = arith.constant 0 : i32
    return %c0_i32, %c0_i32_0 : i32, i32
  }
  func.func @transform_7(%arg0: i32) -> (i32, i32) {
    %c0_i32 = arith.constant 0 : i32
    %c0_i32_0 = arith.constant 0 : i32
    %c0_i32_1 = arith.constant 0 : i32
    return %c0_i32, %c0_i32_0 : i32, i32
  }
  func.func @transform_8(%arg0: i32) -> (i32, i32) {
    %c0_i32 = arith.constant 0 : i32
    %c0_i32_0 = arith.constant 0 : i32
    return %arg0, %c0_i32 : i32, i32
  }
}

</mosaic_0001>

<bundles_post_ra>
// kernel: decoder_layer_forward.8
= control target key start
LH: loop header
LB: loop body
LE: loop exit
PB: predicated region body
PF: predicated region fallthrough
CT: control target
= control target key end

     0   :  { %vm27_vm0 = vcmask 261120   ;;  %vm109_vm1 = vcmask 785408   ;;  %s191_s1 = inlined_call_operand.vmem [shape: f32[32,96], index: 1, kind: input, shape index: {}]   ;;  %s192_s0 = inlined_call_operand.vmem [shape: f32[16,32], index: 0, kind: input, shape index: {}]   ;;  %s193_s2 = inlined_call_operand.vmem [shape: f32[1,96], index: 2, kind: input, shape index: {}]   ;;  %s194_s3 = inlined_call_operand.vmem [shape: f32[16,96], index: 3, kind: output, shape index: {}]  }
   0x1   :  { %v16_v0 = vld [vmem:[%s191_s1] sm:$0xff]  ;;  %v17_v1 = vld [vmem:[%s191_s1 + $0x8] sm:$0xff]  ;;  %v18_v2 = vld [vmem:[%s191_s1 + $0x10] sm:$0xff] }
   0x2   :  { %v136_v3 = vpack.c.bf16 %v17_v1, %v16_v0  ;;  %v19_v4 = vld [vmem:[%s191_s1 + $0x18] sm:$0xff]  ;;  %v14_v5 = vld [vmem:[%s192_s0] sm:$0xff]  ;;  %v15_v7 = vld [vmem:[%s192_s0 + $0x8] sm:$0xff] }
   0x3   :  { %v140_v6 = vpack.c.bf16 %v19_v4, %v18_v2  ;;  %133 = vmatprep.mubr.msk.f32.mxu0 %vm27_vm0, %v14_v5  ;;  %v116_v8 = vld [vmem:[%s193_s2] ss:$0 sm:$0xff] }
   0x4   :  { %137 = vmatprep.subr.bf16.mxu0 %v136_v3 }
   0x5   :  { %139 = vmatpush3.bf16.msra.mxu0 %v136_v3 }
   0x6   :  { %141 = vmatprep.subr.bf16.mxu0 %v140_v6 }
   0x9   :  { %143 = vmatpush3.bf16.msra.mxu0 %v140_v6 }
   0xc   :  { %134 = vmatmul.mubr.msk.f32.vlgmr.msra.gmra.mrb[0].mxu0 %vm27_vm0, %v15_v7 }
  0xdf   :  { %v135_v9 = vpop.f32.mrb[0].mxu0 }
  0xe0   :  { %v106_v10 = vadd.f32 %v135_v9, %v116_v8  ;;  %v100_v11 = vpop.f32.mrb[1].mxu0 }
  0xe1   :  { %v101_v12 = vadd.f32 %v116_v8, %v100_v11 }
  0xe2   :  { %111 = vst.msk [vmem:[%s194_s3 + $0x8] sm:$0xff] %vm109_vm1, %v106_v10 }
  0xe3   :  { %110 = vst.msk [vmem:[%s194_s3] sm:$0xff] %vm109_vm1, %v101_v12 }

// kernel: decoder_layer_forward.11
= control target key start
LH: loop header
LB: loop body
LE: loop exit
PB: predicated region body
PF: predicated region fallthrough
CT: control target
= control target key end

     0   :  { %vm27_vm0 = vcmask 261120   ;;  %s194_s1 = inlined_call_operand.vmem [shape: f32[32,32], index: 1, kind: input, shape index: {}]   ;;  %s195_s0 = inlined_call_operand.vmem [shape: f32[16,32], index: 0, kind: input, shape index: {}]   ;;  %s196_s2 = inlined_call_operand.vmem [shape: f32[1,32], index: 2, kind: input, shape index: {}]   ;;  %s197_s3 = inlined_call_operand.vmem [shape: f32[16,32], index: 3, kind: output, shape index: {}]  }
   0x1   :  { %v16_v0 = vld [vmem:[%s194_s1] sm:$0xff]  ;;  %v17_v1 = vld [vmem:[%s194_s1 + $0x8] sm:$0xff]  ;;  %v18_v2 = vld [vmem:[%s194_s1 + $0x10] sm:$0xff] }
   0x2   :  { %v135_v3 = vpack.c.bf16 %v17_v1, %v16_v0  ;;  %v19_v4 = vld [vmem:[%s194_s1 + $0x18] sm:$0xff]  ;;  %v14_v5 = vld [vmem:[%s195_s0] sm:$0xff]  ;;  %v15_v7 = vld [vmem:[%s195_s0 + $0x8] sm:$0xff] }
   0x3   :  { %v139_v6 = vpack.c.bf16 %v19_v4, %v18_v2  ;;  %132 = vmatprep.mubr.msk.f32.mxu0 %vm27_vm0, %v14_v5  ;;  %v115_v8 = vld [vmem:[%s196_s2] ss:$0 sm:$0xff] }
   0x4   :  { %136 = vmatprep.subr.bf16.mxu0 %v135_v3 }
   0x5   :  { %138 = vmatpush3.bf16.msra.mxu0 %v135_v3 }
   0x6   :  { %140 = vmatprep.subr.bf16.mxu0 %v139_v6 }
   0x9   :  { %142 = vmatpush3.bf16.msra.mxu0 %v139_v6 }
   0xc   :  { %133 = vmatmul.mubr.msk.f32.vlgmr.msra.gmra.mrb[0].mxu0 %vm27_vm0, %v15_v7 }
  0xdf   :  { %v134_v9 = vpop.f32.mrb[0].mxu0 }
  0xe0   :  { %v106_v10 = vadd.f32 %v134_v9, %v115_v8  ;;  %v100_v11 = vpop.f32.mrb[1].mxu0 }
  0xe1   :  { %v101_v12 = vadd.f32 %v115_v8, %v100_v11 }
  0xe2   :  { %110 = vst.msk [vmem:[%s197_s3 + $0x8] sm:$0xff] %vm27_vm0, %v106_v10 }
  0xe3   :  { %109 = vst.msk [vmem:[%s197_s3] sm:$0xff] %vm27_vm0, %v101_v12 }

// kernel: decoder_layer_forward.9
= control target key start
LH: loop header
LB: loop body
LE: loop exit
PB: predicated region body
PF: predicated region fallthrough
CT: control target
= control target key end

     0   :  { %s724_s15 = smov 0   ;;  %s726_s16 = smov 0   ;;  %s796_s0 = inlined_call_operand.vmem [shape: f32[2,4,8,8], index: 0, kind: input, shape index: {}]   ;;  %s797_s1 = inlined_call_operand.vmem [shape: f32[2,4,8,8], index: 1, kind: input, shape index: {}]   ;;  %s798_s2 = inlined_call_operand.vmem [shape: f32[2,4,8,8], index: 2, kind: input, shape index: {}]   ;;  %s799_s3 = inlined_call_operand.vmem [shape: f32[8,8], index: 3, kind: input, shape index: {}]   ;;  %s800_s4 = inlined_call_operand.vmem [shape: f32[2,4,8,8], index: 4, kind: output, shape index: {}]  }
   0x1   :  { %s728_s17 = smov 0   ;;  %s730_s18 = smov 0  }
   0x2   :  { %s732_s19 = smov 0  }
   0x3 LB: > { %s23_s20 = sadd.s32 1, %s687_s17  ;;  %s26_s21 = sadd.s32 1, %s691_s18  ;;  %s695_s19 = sphi %s732_s19, %s14_s19   ;;  %s691_s18 = sphi %s730_s18, %s804_s18   ;;  %s687_s17 = sphi %s728_s17, %s803_s17   ;;  %s683_s16 = sphi %s726_s16, %s802_s16   ;;  %s679_s15 = sphi %s724_s15, %s801_s15  }
   0x4   : > { %p24_p0 = scmp.ge.s32.totalorder %s23_s20, 4  ;;  %p583_p1 = scmp.ge.s32.totalorder %s695_s19, 1 }
   0x5   : > { %p211_p2 = scmp.lt.s32.totalorder %s695_s19, 9 }
   0x6   : > { %s806_s20 = smov (%p24_p0, %s23_s20), 0  ;;  %s808_s21 = smov (!%p24_p0, %s26_s21), %s691_s18 }
   0x7   : > { %p212_p3 = pnand %p583_p1, %p211_p2  ;;  %p28_p4 = scmp.ge.s32.totalorder %s808_s21, 2 }
   0x8   : > { %p259_p5 = scmp.lt.s32.totalorder (!%p212_p3), %s683_s16, 1  ;;  %p261_p6 = scmp.lt.s32.totalorder (!%p212_p3), %s679_s15, 3  ;;  %v697_v0 = vmov (!%p212_p3), 0.0   ;;  %vm698_vm0 = vmmov (!%p212_p3), 0   ;;  %vm295_vm1 = vcmask (!%p212_p3), 64512   ;;  %v294_v3 = vld [vmem:[%s799_s3] sm:$0xff] (!%p212_p3) }
   0x9   : > { %s810_s21 = smov (%p28_p4, %s808_s21), 0  ;;  %215 = sbr.rel (%p212_p3) target bundleno = 766 (0x2fe), region = 36 }
   0xa   : > { %601 = vmatprep.subr.mxu0 (!%p212_p3), %v697_v0  ;;  %603 = vmatprep.mubr.msk.f32.mxu0 (!%p212_p3), %vm698_vm0, %v697_v0 }
   0xb   : > { %606 = vmatprep.subr.mxu1 (!%p212_p3), %v697_v0  ;;  %608 = vmatprep.mubr.msk.f32.mxu1 (!%p212_p3), %vm698_vm0, %v697_v0 }
  0x10   : > { %s812_s16 = smov (!%p259_p5, %s683_s16), 1  ;;  %s814_s15 = smov (!%p261_p6, %s679_s15), 3 }
  0x11   : > { %s584_s22 = sshll.u32 %s812_s16, 2 }
  0x12   : > { %s264_s23 = sadd.s32 %s584_s22, %s814_s15 }
  0x13   : > { %s754_s24 = sshll.u32 %s264_s23, 3 }
  0x14   : > { %s274_s27 = scalar_lea.vmem %s797_s1, %s754_s24  ;;  %s266_s30 = scalar_lea.vmem %s796_s0, %s754_s24 }
  0x15   : > { %v292_v1 = vld [vmem:[%s274_s27] sm:$0xff]  ;;  %s282_s9 = scalar_lea.vmem %s798_s2, %s754_s24  ;;  %s290_s12 = scalar_lea.vmem %s800_s4, %s754_s24 }
  0x16   : > { %602 = vmatpush3.xpose.msk.msra.mxu0 %vm295_vm1, %v292_v1  ;;  %v291_v2 = vld [vmem:[%s266_s30] sm:$0xff] }
  0x17   : > { %v293_v13 = vld [vmem:[%s282_s9] sm:$0xff] }
  0x18   : > { %607 = vmatpush3.msra.mxu1 %v293_v13 }
  0x19   : > { %604 = vmatmul.mubr.msk.f32.vlgmr.msra.gmra.mrb[0].mxu0 %vm295_vm1, %v291_v2 }
  0xec   : > { %v368_v4 = vpop.f32.mrb[0].mxu0 }
  0xed   : > { %v369_v5 = vadd.f32 %v368_v4, %v294_v3  ;;  %v605_v6 = vpop.f32.mrb[1].mxu0 }
  0xef   : > { %v372_v7 = vsel %vm295_vm1, %v369_v5, -inf }
  0xf0   : > { %373 = vmax.xlane.f32.xlu0 %v372_v7 }
 0x17d   : > { %v374_v8 = vpop.xlane.xlu0 %373 }
 0x17e   : > { %v375_v9 = vsub.f32 %v369_v5, %v374_v8 }
 0x180   : > { %v376_v10 = vmul.f32 1.442695, %v375_v9 }
 0x182   : > { %653 = vpow2.f32 %v376_v10 }
 0x18c   : > { %v654_v11 = vpop.eup %653 }
 0x18d   : > { %v378_v12 = vsel %vm295_vm1, %v654_v11, 0.0 }
 0x18e   : > { %379 = vadd.xlane.f32.xlu0 %v378_v12 }
 0x21b   : > { %v380_v14 = vpop.xlane.xlu0 %379 }
 0x21c   : > { %655 = vrcp.f32 %v380_v14 }
 0x226   : > { %v656_v15 = vpop.eup %655 }
 0x227   : > { %v382_v16 = vmul.f32 %v656_v15, %v654_v11 }
 0x229   : > { %609 = vmatmul.mubr.msk.f32.vlgmr.msra.gmra.mrb[0].mxu1 %vm295_vm1, %v382_v16 }
 0x2fc   : > { %v452_v17 = vpop.f32.mrb[0].mxu1 }
 0x2fd   : > { %456 = vst.msk [vmem:[%s290_s12] sm:$0xff] %vm295_vm1, %v452_v17  ;;  %v610_v18 = vpop.f32.mrb[1].mxu1 }
 0x2fe PF: > { %s14_s19 = sadd.s32 1, %s695_s19   ;;  %s801_s15 = smov %s687_s17 }
 0x2ff   : > { %p11_p7 = scmp.ge.s32.totalorder %s14_s19, 10   ;;  %s802_s16 = smov %s691_s18 }
 0x300   : > { %s803_s17 = smov %s806_s20  ;;  %s804_s18 = smov %s810_s21 }
 0x301   :  { %13 = sbr.rel (!%p11_p7) target bundleno = 3 (0x3), region = 72 }

// kernel: decoder_layer_forward.10
= control target key start
LH: loop header
LB: loop body
LE: loop exit
PB: predicated region body
PF: predicated region fallthrough
CT: control target
= control target key end

     0   :  { %vm36_vm0 = vcmask 261120   ;;  %s289_s2 = inlined_call_operand.vmem [shape: f32[32,32], index: 2, kind: input, shape index: {}]   ;;  %s290_s0 = inlined_call_operand.vmem [shape: f32[16,32], index: 0, kind: input, shape index: {}]   ;;  %s291_s3 = inlined_call_operand.vmem [shape: f32[1,32], index: 3, kind: input, shape index: {}]   ;;  %s292_s1 = inlined_call_operand.vmem [shape: f32[16,32], index: 1, kind: input, shape index: {}]   ;;  %s293_s4 = inlined_call_operand.vmem [shape: f32[1,32], index: 4, kind: input, shape index: {}]   ;;  %s294_s5 = inlined_call_operand.vmem [shape: f32[1,32], index: 5, kind: input, shape index: {}]   ;;  %s295_s6 = inlined_call_operand.vmem [shape: f32[16,32], index: 6, kind: output, shape index: {}]  }
   0x1   :  { %v25_v0 = vld [vmem:[%s289_s2] sm:$0xff]  ;;  %v26_v1 = vld [vmem:[%s289_s2 + $0x8] sm:$0xff]  ;;  %v27_v2 = vld [vmem:[%s289_s2 + $0x10] sm:$0xff] }
   0x2   :  { %v195_v3 = vpack.c.bf16 %v26_v1, %v25_v0  ;;  %v28_v4 = vld [vmem:[%s289_s2 + $0x18] sm:$0xff]  ;;  %v23_v5 = vld [vmem:[%s290_s0] sm:$0xff]  ;;  %v24_v7 = vld [vmem:[%s290_s0 + $0x8] sm:$0xff] }
   0x3   :  { %v199_v6 = vpack.c.bf16 %v28_v4, %v27_v2  ;;  %192 = vmatprep.mubr.msk.f32.mxu0 %vm36_vm0, %v23_v5  ;;  %v173_v8 = vld [vmem:[%s291_s3] ss:$0 sm:$0xff]  ;;  %v119_v14 = vld [vmem:[%s292_s1 + $0x8] sm:$0xff] }
   0x4   :  { %196 = vmatprep.subr.bf16.mxu0 %v195_v3  ;;  %v118_v11 = vld [vmem:[%s292_s1] sm:$0xff] }
   0x5   :  { %198 = vmatpush3.bf16.msra.mxu0 %v195_v3  ;;  %v176_v36 = vld [vmem:[%s293_s4] ss:$0 sm:$0xff] }
   0x6   :  { %200 = vmatprep.subr.bf16.mxu0 %v199_v6  ;;  %v177_v38 = vld [vmem:[%s294_s5] ss:$0 sm:$0xff] }
   0x9   :  { %202 = vmatpush3.bf16.msra.mxu0 %v199_v6 }
   0xc   :  { %193 = vmatmul.mubr.msk.f32.vlgmr.msra.gmra.mrb[0].mxu0 %vm36_vm0, %v24_v7 }
  0xdf   :  { %v194_v9 = vpop.f32.mrb[0].mxu0 }
  0xe0   :  { %v109_v10 = vpop.f32.mrb[1].mxu0  ;;  %v115_v12 = vadd.f32 %v194_v9, %v173_v8 }
  0xe1   :  { %v110_v13 = vadd.f32 %v173_v8, %v109_v10 }
  0xe2   :  { %v121_v17 = vadd.f32 %v119_v14, %v115_v12 }
  0xe3   :  { %v120_v15 = vadd.f32 %v118_v11, %v110_v13 }
  0xe4   :  { %v125_v18 = vsel %vm36_vm0, %v121_v17, 0.0 }
  0xe5   :  { %v122_v16 = vsel %vm36_vm0, %v120_v15, 0.0 }
  0xe6   :  { %123 = vadd.xlane.f32.xlu0 %v122_v16 }
  0xea   :  { %126 = vadd.xlane.f32.xlu0 %v125_v18 }
 0x173   :  { %v124_v19 = vpop.xlane.xlu0 %123 }
 0x174   :  { %v129_v20 = vmul.f32 0.03125, %v124_v19 }
 0x176   :  { %v131_v21 = vsub.f32 %v120_v15, %v129_v20 }
 0x177   :  { %v127_v22 = vpop.xlane.xlu0 %126 }
 0x178   :  { %v130_v23 = vmul.f32 0.03125, %v127_v22  ;;  %v133_v24 = vmul.f32 %v131_v21, %v131_v21 }
 0x17a   :  { %v132_v25 = vsub.f32 %v121_v17, %v130_v23  ;;  %v135_v26 = vsel %vm36_vm0, %v133_v24, 0.0 }
 0x17b   :  { %136 = vadd.xlane.f32.xlu1 %v135_v26 }
 0x17c   :  { %v134_v27 = vmul.f32 %v132_v25, %v132_v25 }
 0x17e   :  { %v138_v28 = vsel %vm36_vm0, %v134_v27, 0.0 }
 0x17f   :  { %139 = vadd.xlane.f32.xlu1 %v138_v28 }
 0x208   :  { %v137_v29 = vpop.xlane.xlu1 %136 }
 0x209   :  { %v141_v30 = vmul.f32 0.03125, %v137_v29 }
 0x20b   :  { %v143_v31 = vadd.f32 1e-05, %v141_v30 }
 0x20c   :  { %v140_v32 = vpop.xlane.xlu1 %139 }
 0x20d   :  { %203 = vrsqrt.f32 %v143_v31  ;;  %v142_v33 = vmul.f32 0.03125, %v140_v32 }
 0x20f   :  { %v144_v34 = vadd.f32 1e-05, %v142_v33 }
 0x211   :  { %205 = vrsqrt.f32 %v144_v34 }
 0x217   :  { %v204_v35 = vpop.eup %203 }
 0x218   :  { %v147_v37 = vmul.f32 %v204_v35, %v131_v21 }
 0x21a   :  { %v156_v39 = vmul.f32 %v176_v36, %v147_v37 }
 0x21b   :  { %v206_v40 = vpop.eup %205 }
 0x21c   :  { %v165_v41 = vadd.f32 %v177_v38, %v156_v39  ;;  %v148_v42 = vmul.f32 %v206_v40, %v132_v25 }
 0x21e   :  { %167 = vst.msk [vmem:[%s295_s6] sm:$0xff] %vm36_vm0, %v165_v41  ;;  %v157_v43 = vmul.f32 %v176_v36, %v148_v42 }
 0x220   :  { %v166_v44 = vadd.f32 %v177_v38, %v157_v43 }
 0x222   :  { %168 = vst.msk [vmem:[%s295_s6 + $0x8] sm:$0xff] %vm36_vm0, %v166_v44 }

// kernel: decoder_layer_forward.12
= control target key start
LH: loop header
LB: loop body
LE: loop exit
PB: predicated region body
PF: predicated region fallthrough
CT: control target
= control target key end

     0   :  { %v180_v0 = vmov 0.0|0.0   ;;  %vm181_vm0 = vmmov 0   ;;  %v182_v6 = vmov 0.0   ;;  %vm30_vm1 = vcmask 392192   ;;  %s245_s1 = inlined_call_operand.vmem [shape: f32[48,64], index: 1, kind: input, shape index: {}]   ;;  %s246_s0 = inlined_call_operand.vmem [shape: f32[24,48], index: 0, kind: input, shape index: {}]   ;;  %s247_s2 = inlined_call_operand.vmem [shape: f32[1,64], index: 2, kind: input, shape index: {}]   ;;  %s248_s3 = inlined_call_operand.vmem [shape: f32[24,64], index: 3, kind: output, shape index: {}]  }
   0x1   :  { %171 = vmatprep.subr.bf16.mxu1 %v180_v0  ;;  %v17_v1 = vld [vmem:[%s245_s1] sm:$0xff]  ;;  %v18_v2 = vld [vmem:[%s245_s1 + $0x8] sm:$0xff]  ;;  %162 = vmatprep.subr.bf16.mxu0 %v180_v0  ;;  %v19_v3 = vld [vmem:[%s245_s1 + $0x10] sm:$0xff]  ;;  %vm120_vm2 = vcmask 523264  }
   0x2   :  { %v163_v4 = vpack.c.bf16 %v18_v2, %v17_v1  ;;  %v20_v5 = vld [vmem:[%s245_s1 + $0x18] sm:$0xff]  ;;  %156 = vmatprep.mubr.msk.f32.mxu1 %vm181_vm0, %v182_v6  ;;  %153 = vmatprep.mubr.msk.f32.mxu0 %vm181_vm0, %v182_v6  ;;  %v21_v8 = vld [vmem:[%s245_s1 + $0x20] sm:$0xff]  ;;  %v22_v9 = vld [vmem:[%s245_s1 + $0x28] sm:$0xff] }
   0x3   :  { %v166_v7 = vpack.c.bf16 %v20_v5, %v19_v3  ;;  %v169_v10 = vpack.c.bf16 %v22_v9, %v21_v8  ;;  %v15_v11 = vld [vmem:[%s246_s0 + $0x8] sm:$0xff]  ;;  %v14_v12 = vld [vmem:[%s246_s0] sm:$0xff]  ;;  %v16_v13 = vld [vmem:[%s246_s0 + $0x10] sm:$0xff] }
   0x4   :  { %174 = vmatpush3.bf16.msra.mxu1 %v163_v4  ;;  %164 = vmatpush3.bf16.msra.mxu0 %v163_v4  ;;  %v128_v14 = vld [vmem:[%s247_s2] ss:$0 sm:$0xff] }
   0x5   :  { %172 = vmatprep.subr.bf16.mxu1 %v180_v0  ;;  %165 = vmatprep.subr.bf16.mxu0 %v180_v0 }
   0x8   :  { %175 = vmatpush3.bf16.msra.mxu1 %v166_v7  ;;  %167 = vmatpush3.bf16.msra.mxu0 %v166_v7 }
   0x9   :  { %173 = vmatprep.subr.bf16.mxu1 %v180_v0  ;;  %168 = vmatprep.subr.bf16.mxu0 %v180_v0 }
   0xc   :  { %176 = vmatpush3.bf16.msra.mxu1 %v169_v10  ;;  %170 = vmatpush3.bf16.msra.mxu0 %v169_v10 }
   0xf   :  { %157 = vmatmul.mubr.msk.f32.vlgmr.msra.gmra.mrb[0].mxu1 %vm30_vm1, %v15_v11  ;;  %154 = vmatmul.mubr.msk.f32.vlgmr.msra.gmra.mrb[0].mxu0 %vm30_vm1, %v14_v12 }
  0x10   :  { %159 = vmatprep.mubr.msk.f32.mxu1 %vm181_vm0, %v182_v6 }
  0x13   :  { %160 = vmatmul.mubr.msk.f32.gmra.mrb[2].mxu1 %vm30_vm1, %v16_v13 }
  0xe2   :  { %v111_v15 = vpop.f32.mrb[0].mxu1  ;;  %v106_v16 = vpop.f32.mrb[0].mxu0 }
  0xe3   :  { %v112_v17 = vadd.f32 %v128_v14, %v111_v15  ;;  %v158_v18 = vpop.f32.mrb[1].mxu1  ;;  %v107_v19 = vadd.f32 %v128_v14, %v106_v16  ;;  %v155_v20 = vpop.f32.mrb[1].mxu0 }
  0xe5   :  { %122 = vst.msk [vmem:[%s248_s3 + $0x8] sm:$0xff] %vm120_vm2, %v112_v17  ;;  %121 = vst.msk [vmem:[%s248_s3] sm:$0xff] %vm120_vm2, %v107_v19 }
  0xe6   :  { %v116_v21 = vpop.f32.mrb[2].mxu1 }
  0xe7   :  { %v117_v22 = vadd.f32 %v128_v14, %v116_v21  ;;  %v161_v23 = vpop.f32.mrb[3].mxu1 }
  0xe9   :  { %123 = vst.msk [vmem:[%s248_s3 + $0x10] sm:$0xff] %vm120_vm2, %v117_v22 }

// kernel: decoder_layer_forward.13
= control target key start
LH: loop header
LB: loop body
LE: loop exit
PB: predicated region body
PF: predicated region fallthrough
CT: control target
= control target key end

     0   :  { %10 = vsyncpa [#allocation3], 0  ;;  %s1096_s0 = inlined_call_operand.vmem [shape: f32[2,4,8,8], index: 0, kind: input, shape index: {}]   ;;  %s1097_s1 = inlined_call_operand.vmem [shape: f32[2,4,12,8], index: 1, kind: input, shape index: {}]   ;;  %s1098_s2 = inlined_call_operand.vmem [shape: f32[2,4,12,8], index: 2, kind: input, shape index: {}]   ;;  %s1099_s3 = inlined_call_operand.vmem [shape: f32[2,4,8,8], index: 3, kind: output, shape index: {0}]   ;;  %s1100_s4 = inlined_call_operand.hbm [shape: f32[2,8,12], index: 4, kind: output, shape index: {1}]  }
   0x1   :  { %12 = vsyncpa [#allocation3 + $0x1], 0  ;;  %s933_s15 = smov 0   ;;  %s935_s16 = smov 0  }
   0x2   :  { %s937_s17 = smov 0   ;;  %s939_s18 = smov 0  }
   0x3   :  { %s941_s19 = smov 0   ;;  %s943_s20 = smov 0  }
   0x4   :  { %s945_s21 = smov 0   ;;  %s947_s22 = smov 0  }
   0x5 LB: > { %1107 = sst [smem:[#allocation5_spill]] %s880_s17  ;;  %s672_s23 = sadd.s32 4294967295, %s900_s22   ;;  %s900_s22 = sphi %s947_s22, %s18_s22   ;;  %s896_s21 = sphi %s945_s21, %s1123_s21   ;;  %s892_s20 = sphi %s943_s20, %s1122_s20   ;;  %s888_s19 = sphi %s941_s19, %s1121_s19   ;;  %s884_s18 = sphi %s939_s18, %s1120_s18   ;;  %s880_s17 = sphi %s937_s17, %s1119_s17   ;;  %s876_s16 = sphi %s935_s16, %s1125_s16   ;;  %s872_s15 = sphi %s933_s15, %s1124_s15  }
   0x6   : > { %1108 = sst [smem:[#allocation6_spill]] %s892_s20  ;;  %s673_s24 = sadd.s32 4294967294, %s900_s22  }
   0x7   : > { %1109 = sst [smem:[#allocation7_spill]] %s896_s21  ;;  %s27_s25 = sadd.s32 1, %s892_s20 }
   0x8   : > { %p28_p0 = scmp.ge.s32.totalorder %s27_s25, 4  ;;  %s30_s26 = sadd.s32 1, %s896_s21 }
   0x9   : > { %p159_p1 = scmp.ne.s32.totalorder %s880_s17, %s876_s16  ;;  %p160_p2 = scmp.eq.s32.totalorder %s672_s23, 7 }
   0xa   : > { %s1127_s25 = smov (%p28_p0, %s27_s25), 0  ;;  %s1129_s26 = smov (!%p28_p0, %s30_s26), %s896_s21 }
   0xb   : > { %1110 = sst [smem:[#allocation8_spill]] %s1127_s25  ;;  %p982_p3 = por %p160_p2, %p159_p1 }
   0xc   : > { %p165_p4 = scmp.ne.s32.totalorder %s876_s16, %s872_s15  ;;  %p32_p5 = scmp.ge.s32.totalorder %s1129_s26, 2 }
   0xd   : > { %p166_p6 = scmp.eq.s32.totalorder %s673_s24, 7  ;;  %p676_p7 = scmp.ge.s32.totalorder %s900_s22, 1 }
   0xe   : > { %p219_p8 = scmp.lt.s32.totalorder %s900_s22, 9  ;;  %s1131_s26 = smov (%p32_p5, %s1129_s26), 0 }
   0xf   : > { %1112 = sst [smem:[#allocation9_spill]] %s1131_s26  ;;  %p992_p9 = por %p166_p6, %p165_p4 }
  0x10   : > { %p220_p10 = pnand %p676_p7, %p219_p8  ;;  %s146_s29 = ssub.s32 %s896_s21, %s1131_s26 }
  0x11   : > { %s1113_s28 = scalar_select %p992_p9, 1, 0 }
  0x12   : > { %s149_s30 = sadd.s32 1, %s880_s17  ;;  %p147_p11 = scmp.eq.s32.totalorder %s146_s29, 0 }
  0x13   : > { %1114 = sst [smem:[#allocation10_spill]] %s1113_s28  ;;  %223 = sbr.rel (%p220_p10) target bundleno = 790 (0x316), region = 32 }
  0x14   : > { %s1000_s5 = scalar_select %p147_p11, %s880_s17, %s149_s30  }
  0x15   : > { %s1104_s6 = sand.u32 (!%p220_p10), 1, %s876_s16   ;;  %p274_p12 = scmp.lt.s32.totalorder (!%p220_p10), %s888_s19, 1 }
  0x16   : > { %1115 = sst [smem:[#allocation11_spill]] %s1000_s5  ;;  %s677_s7 = sshll.u32 (!%p220_p10), %s1104_s6, 3 }
  0x17   : > { %p276_p13 = scmp.lt.s32.totalorder (!%p220_p10), %s884_s18, 3  ;;  %p688_p0 = scmp.ne.s32.totalorder (!%p220_p10), %s884_s18, 0 }
  0x1a   : > { %s275_s8 = scalar_select %p274_p12, %s888_s19, 1 }
  0x1b   : > { %s277_s9 = scalar_select %p276_p13, %s884_s18, 3 }
  0x1c   : > { %s678_s10 = sshll.u32 %s275_s8, 2  ;;  %s681_s11 = sshll.u32 %s275_s8, 3  ;;  %vm312_vm0 = vcmask (!%p688_p0), 97280   ;;  %v902_v0 = vmov (!%p688_p0), 0.0  }
  0x1d   : > { %s279_s12 = sadd.s32 %s678_s10, %s277_s9  ;;  %s680_s13 = sshll.u32 %s277_s9, 1 }
  0x1e   : > { %s679_s14 = sshll.u32 %s279_s12, 3  ;;  %s288_s23 = sadd.s32 %s681_s11, %s680_s13 }
  0x1f   : > { %s281_s30 = scalar_lea.vmem %s1096_s0, %s679_s14  ;;  %s682_s26 = sshll.u32 %s288_s23, 3 }
  0x20   : > { %s290_s20 = scalar_lea.vmem %s1097_s1, %s682_s26  ;;  %s1018_s17 = scalar_lea.vmem %s1098_s2, %s682_s26 }
  0x21   : > { %s1023_s9 = scalar_lea.vmem %s1099_s3, %s679_s14  ;;  %s1025_s10 = scalar_lea.vmem [#allocation2], %s677_s7 }
  0x22   : > { %311 = sbr.rel (%p688_p0) target bundleno = 41 (0x29), region = 36  ;;  %313 = vst.msk [vmem:[%s1025_s10] sm:$0xff] (!%p688_p0), %vm312_vm0, %v902_v0 }
  0x29 PF: > { %v315_v1 = vld [vmem:[%s290_s20] sm:$0xff]  ;;  %v316_v2 = vld [vmem:[%s290_s20 + $0x8] sm:$0xf]  ;;  %vm319_vm1 = vcmask 64512   ;;  %v903_v3 = vmov 0.0|0.0   ;;  %vm904_vm3 = vmmov 0  }
  0x2a   : > { %718 = vmatprep.subr.bf16.mxu0 %v903_v3  ;;  %v719_v4 = vpack.c.bf16 %v316_v2, %v315_v1  ;;  %vm720_vm2 = vmpackc.low %vm319_vm1, %vm319_vm1  ;;  %722 = vmatprep.subr.bf16.mxu1 %v903_v3  ;;  %v905_v5 = vmov 0.0   ;;  %v314_v6 = vld [vmem:[%s281_s30] sm:$0xff]  ;;  %vm399_vm4 = vcmask 97280   ;;  %v318_v16 = vld [vmem:[%s1018_s17 + $0x8] sm:$0xf]  ;;  %vm418_vm5 = vcmask 1043456  }
  0x2b   : > { %708 = vmatprep.mubr.msk.f32.mxu0 %vm904_vm3, %v905_v5  ;;  %715 = vmatprep.mubr.msk.f32.mxu1 %vm904_vm3, %v905_v5  ;;  %v317_v15 = vld [vmem:[%s1018_s17] sm:$0xff]  ;;  %vm906_vm6 = vmmov 1   ;;  %s695_s17 = sshll.u32 %s888_s19, 7  ;;  %s518_s18 = sshll.u32 %s1025_s10, 4  ;;  %s519_s18 = int_to_ptr.vmem [resolvable:$true] %s518_s18 }
  0x2c   : > { %721 = vmatpush3.bf16.xpose.msk.msra.mxu0 %vm720_vm2, %v719_v4  ;;  %v723_v17 = vpack.c.bf16 %v318_v16, %v317_v15  ;;  %vm724_vm7 = vmpackc.low %vm418_vm5, %vm906_vm6  ;;  %v411_v21 = vld [vmem:[%s1025_s10] sm:$0xff]  ;;  %s1045_s25 = scalar_lea.hbm %s1100_s4, %s695_s17  ;;  %s1116_s26 = sand.u32 1, %s876_s16  }
  0x2d   : > { %s502_s28 = scalar_lea.sflag [#allocation3], %s1116_s26  ;;  %s806_s5 = scalar_lea.vmem %s519_s18, 128 }
  0x2e   : > { %725 = vmatpush3.bf16.msk.msra.mxu1 %vm724_vm7, %v723_v17  ;;  %p807_p1 = scmp.ne.s32.totalorder %s519_s18, %s806_s5  ;;  %s907_s6 = smov [#allocation2]  }
  0x2f   : > { %s810_s7 = sshll.u32 %s907_s6, 4  ;;  %s811_s7 = int_to_ptr.vmem [resolvable:$false] %s810_s7 }
  0x30   : > { %p808_p2 = pnand %p807_p1, %p982_p3  ;;  %s812_s11 = scalar_lea.vmem %s811_s7, 256 }
  0x31   : > { %p813_p5 = scmp.lt.s32.totalorder %s519_s18, %s811_s7  ;;  %p814_p6 = scmp.lt.s32.totalorder %s812_s11, %s806_s5 }
  0x32   : > { %p809_p4 = pneg %p808_p2 }
  0x33   : > { %709 = vmatmul.mubr.msk.f32.vlgmr.msra.gmra.mrb[0].mxu0 %vm319_vm1, %v314_v6  ;;  %p815_p7 = por %p814_p6, %p813_p5 }
  0x35   : > { %p816_p8 = pnand %p815_p7, %p809_p4 }
 0x106   : > { %v395_v7 = vpop.f32.mrb[0].mxu0 }
 0x107   : > { %v710_v8 = vpop.f32.mrb[1].mxu0  ;;  %v400_v9 = vsel %vm399_vm4, %v395_v7, -inf }
 0x108   : > { %401 = vmax.xlane.f32.xlu0 %v400_v9 }
 0x195   : > { %v402_v10 = vpop.xlane.xlu0 %401 }
 0x196   : > { %v403_v11 = vsub.f32 %v395_v7, %v402_v10 }
 0x198   : > { %v404_v12 = vmul.f32 1.442695, %v403_v11 }
 0x19a   : > { %802 = vpow2.f32 %v404_v12 }
 0x1a4   : > { %v803_v13 = vpop.eup %802 }
 0x1a5   : > { %v406_v14 = vsel %vm399_vm4, %v803_v13, 0.0 }
 0x1a6   : > { %407 = vadd.xlane.f32.xlu0 %v406_v14 }
 0x233   : > { %v408_v18 = vpop.xlane.xlu0 %407 }
 0x234   : > { %804 = vrcp.f32 %v408_v18 }
 0x23e   : > { %v805_v19 = vpop.eup %804 }
 0x23f   : > { %v410_v20 = vmul.f32 %v805_v19, %v803_v13 }
 0x241   : > { %716 = vmatmul.mubr.msk.f32.vlgmr.msra.gmra.mrb[0].mxu1 %vm399_vm4, %v410_v20  ;;  %v412_v22 = vmul.f32 0.25, %v410_v20 }
 0x243   : > { %v413_v23 = vadd.f32 %v412_v22, %v411_v21 }
 0x245   : > { %414 = vst.msk [vmem:[%s1025_s10] sm:$0xff] %vm399_vm4, %v413_v23 }
 0x246   : > { %819 = shalt.err (!%p816_p8)
}
 0x247   : > { %s820_s19 = scalar_lea.hbm %s1045_s25, 128  ;;  %s824_s14 = scalar_lea.hbm %s1100_s4, 256 }
 0x248   : > { %p821_p10 = scmp.ne.s32.totalorder %s1045_s25, %s820_s19  ;;  %p825_p13 = scmp.lt.u32.totalorder %s1045_s25, %s1100_s4 }
 0x249   : > { %p826_p0 = scmp.lt.u32.totalorder %s824_s14, %s820_s19  ;;  %p828_p2 = scmp.lt.u32.totalorder %s820_s19, %s1045_s25 }
 0x24a   : > { %p822_p11 = pnand %p821_p10, %p982_p3 }
 0x24b   : > { %p827_p1 = por %p826_p0, %p825_p13 }
 0x24c   : > { %p823_p12 = pneg %p822_p11 }
 0x24d   : > { %p829_p4 = por %p828_p2, %p827_p1 }
 0x24f   : > { %p830_p5 = pnand %p829_p4, %p823_p12 }
 0x251   : > { %833 = shalt.err (!%p830_p5)
}
 0x252   : > { %726 = dma.vmem_to_hbm [thread:$0]  (%p982_p3), %s519_s18, 128, %s1045_s25, %s502_s28  }
 0x314   : > { %v488_v24 = vpop.f32.mrb[0].mxu1 }
 0x315   : > { %492 = vst.msk [vmem:[%s1023_s9] sm:$0xff] %vm319_vm1, %v488_v24  ;;  %v717_v25 = vpop.f32.mrb[1].mxu1 }
 0x316 PF: > { %p732_p6 = scmp.ge.s32.totalorder %s900_s22, 2  ;;  %s541_s30 = sand.u32 1, %s872_s15  }
 0x317   : > { %s542_s8 = scalar_lea.sflag [#allocation3], %s541_s30 }
 0x318   : > { %p729_p7 = pnand %p732_p6, %p992_p9 }
 0x31a   : > { %867 = dma.done.wait (!%p729_p7), %s542_s8, 128  }
 0x31b   : > { %869 = vsyncadd (!%p729_p7), %s542_s8, 4294967168  ;;  %s18_s22 = sadd.s32 1, %s900_s22   ;;  %s1118_s27 = sld [smem:[#allocation5_spill]] }
 0x31c   : > { %p15_p8 = scmp.ge.s32.totalorder %s18_s22, 10   ;;  %s1119_s17 = sld [smem:[#allocation11_spill]] }
 0x31d   : > { %s1120_s18 = sld [smem:[#allocation6_spill]]  ;;  %s1121_s19 = sld [smem:[#allocation7_spill]] }
 0x31e   : > { %s1122_s20 = sld [smem:[#allocation8_spill]]  ;;  %s1123_s21 = sld [smem:[#allocation9_spill]] }
 0x31f   : > { %s1124_s15 = smov %s876_s16  ;;  %17 = sbr.rel (!%p15_p8) target bundleno = 5 (0x5), region = 89 }
 0x321   : > { %s1125_s16 = smov %s1118_s27 }
 0x326   :  { %547 = vsyncpa [#allocation3], 1 }
 0x327   :  { %549 = vsyncpa [#allocation3 + $0x1], 1 }

// kernel: decoder_layer_forward.15
= control target key start
LH: loop header
LB: loop body
LE: loop exit
PB: predicated region body
PF: predicated region fallthrough
CT: control target
= control target key end

     0   :  { %vm43_vm0 = vcmask 261120   ;;  %s528_s0 = inlined_call_operand.vmem [shape: f32[16,32], index: 0, kind: input, shape index: {}, may-alias: {0,1}]   ;;  %s529_s1 = inlined_call_operand.vmem [shape: f32[16,32], index: 1, kind: input, shape index: {}, may-alias: {0,1}]   ;;  %s530_s2 = inlined_call_operand.vmem [shape: f32[32,64], index: 2, kind: input, shape index: {}]   ;;  %s531_s3 = inlined_call_operand.vmem [shape: f32[1,64], index: 3, kind: input, shape index: {}]   ;;  %s532_s4 = inlined_call_operand.vmem [shape: f32[64,32], index: 4, kind: input, shape index: {}]   ;;  %s533_s5 = inlined_call_operand.vmem [shape: f32[1,32], index: 5, kind: input, shape index: {}]   ;;  %s534_s6 = inlined_call_operand.vmem [shape: f32[1,32], index: 6, kind: input, shape index: {}]   ;;  %s535_s7 = inlined_call_operand.vmem [shape: f32[1,32], index: 7, kind: input, shape index: {}]   ;;  %s536_s8 = inlined_call_operand.hbm [shape: f32[16,32], index: 8, kind: output, shape index: {}]  }
   0x1   :  { %v32_v0 = vld [vmem:[%s530_s2] sm:$0xff]  ;;  %v33_v1 = vld [vmem:[%s530_s2 + $0x8] sm:$0xff]  ;;  %v34_v2 = vld [vmem:[%s530_s2 + $0x10] sm:$0xff] }
   0x2   :  { %v345_v3 = vpack.c.bf16 %v33_v1, %v32_v0  ;;  %v35_v4 = vld [vmem:[%s530_s2 + $0x18] sm:$0xff]  ;;  %v30_v5 = vld [vmem:[%s528_s0] sm:$0xff]  ;;  %v128_v8 = vld [vmem:[%s532_s4 + $0x8] sm:$0xff] }
   0x3   :  { %v349_v6 = vpack.c.bf16 %v35_v4, %v34_v2  ;;  %323 = vmatprep.mubr.msk.f32.mxu0 %vm43_vm0, %v30_v5  ;;  %v127_v7 = vld [vmem:[%s532_s4] sm:$0xff]  ;;  %v129_v9 = vld [vmem:[%s532_s4 + $0x10] sm:$0xff]  ;;  %v130_v11 = vld [vmem:[%s532_s4 + $0x18] sm:$0xff] }
   0x4   :  { %346 = vmatprep.subr.bf16.mxu0 %v345_v3  ;;  %v353_v10 = vpack.c.bf16 %v128_v8, %v127_v7  ;;  %v357_v12 = vpack.c.bf16 %v130_v11, %v129_v9  ;;  %v131_v13 = vld [vmem:[%s532_s4 + $0x20] sm:$0xff]  ;;  %v132_v14 = vld [vmem:[%s532_s4 + $0x28] sm:$0xff] }
   0x5   :  { %348 = vmatpush3.bf16.msra.mxu0 %v345_v3 }
   0x6   :  { %13 = vsyncpa [#allocation3], 0  ;;  %350 = vmatprep.subr.bf16.mxu0 %v349_v6  ;;  %354 = vmatprep.subr.bf16.mxu1 %v353_v10  ;;  %v361_v15 = vpack.c.bf16 %v132_v14, %v131_v13  ;;  %v31_v16 = vld [vmem:[%s528_s0 + $0x8] sm:$0xff]  ;;  %v133_v17 = vld [vmem:[%s532_s4 + $0x30] sm:$0xff]  ;;  %vm142_vm1 = vcmask 523264   ;;  %s400_s17 = smov [#allocation2]  }
   0x7   :  { %356 = vmatpush3.bf16.msra.mxu1 %v353_v10  ;;  %v134_v18 = vld [vmem:[%s532_s4 + $0x38] sm:$0xff]  ;;  %v291_v20 = vld [vmem:[%s531_s3] ss:$0 sm:$0xff]  ;;  %v225_v33 = vld [vmem:[%s529_s1 + $0x8] sm:$0xff]  ;;  %s280_s18 = sshll.u32 %s400_s17, 4  ;;  %s281_s18 = int_to_ptr.vmem [resolvable:$true] %s280_s18 }
   0x8   :  { %358 = vmatprep.subr.bf16.mxu1 %v357_v12  ;;  %v365_v19 = vpack.c.bf16 %v134_v18, %v133_v17  ;;  %v294_v27 = vld [vmem:[%s533_s5] ss:$0 sm:$0xff]  ;;  %s376_s19 = scalar_lea.vmem %s281_s18, 256  ;;  %p381_p1 = scmp.lt.s32.totalorder %s281_s18, %s281_s18 }
   0x9   :  { %352 = vmatpush3.bf16.msra.mxu0 %v349_v6  ;;  %v224_v30 = vld [vmem:[%s529_s1] sm:$0xff]  ;;  %p377_p0 = scmp.ne.s32.totalorder %s281_s18, %s376_s19  ;;  %p382_p2 = scmp.lt.s32.totalorder %s376_s19, %s376_s19 }
   0xa   :  { %v297_v55 = vld [vmem:[%s534_s6] ss:$0 sm:$0xff] }
   0xb   :  { %360 = vmatpush3.bf16.msra.mxu1 %v357_v12  ;;  %v298_v57 = vld [vmem:[%s535_s7] ss:$0 sm:$0xff]  ;;  %p383_p3 = por %p382_p2, %p381_p1 }
   0xc   :  { %324 = vmatmul.mubr.msk.f32.vlgmr.msra.gmra.mrb[0].mxu0 %vm43_vm0, %v31_v16  ;;  %362 = vmatprep.subr.bf16.mxu1 %v361_v15 }
   0xd   :  { %p384_p4 = pnand %p383_p3, %p377_p0 }
   0xf   :  { %364 = vmatpush3.bf16.msra.mxu1 %v361_v15 }
  0x10   :  { %366 = vmatprep.subr.bf16.mxu1 %v365_v19 }
  0x13   :  { %368 = vmatpush3.bf16.msra.mxu1 %v365_v19 }
  0xdf   :  { %v325_v21 = vpop.f32.mrb[0].mxu0 }
  0xe0   :  { %v122_v22 = vadd.f32 %v325_v21, %v291_v20  ;;  %v116_v23 = vpop.f32.mrb[1].mxu0 }
  0xe1   :  { %v117_v24 = vadd.f32 %v291_v20, %v116_v23 }
  0xe2   :  { %v126_v26 = vmax.f32 %v122_v22, 0.0 }
  0xe3   :  { %v125_v25 = vmax.f32 %v117_v24, 0.0 }
  0xe5   :  { %342 = vmatprep.mubr.msk.f32.mxu1 %vm142_vm1, %v125_v25 }
  0xe6   :  { %343 = vmatmul.mubr.msk.f32.vlgmr.msra.gmra.mrb[0].mxu1 %vm142_vm1, %v126_v26 }
 0x1b9   :  { %v344_v28 = vpop.f32.mrb[0].mxu1 }
 0x1ba   :  { %v215_v29 = vpop.f32.mrb[1].mxu1  ;;  %v221_v31 = vadd.f32 %v344_v28, %v294_v27 }
 0x1bb   :  { %v216_v32 = vadd.f32 %v294_v27, %v215_v29 }
 0x1bc   :  { %v227_v36 = vadd.f32 %v225_v33, %v221_v31 }
 0x1bd   :  { %v226_v34 = vadd.f32 %v224_v30, %v216_v32 }
 0x1be   :  { %v231_v37 = vsel %vm43_vm0, %v227_v36, 0.0 }
 0x1bf   :  { %v228_v35 = vsel %vm43_vm0, %v226_v34, 0.0 }
 0x1c0   :  { %229 = vadd.xlane.f32.xlu0 %v228_v35 }
 0x1c4   :  { %232 = vadd.xlane.f32.xlu0 %v231_v37 }
 0x24d   :  { %v230_v38 = vpop.xlane.xlu0 %229 }
 0x24e   :  { %v235_v39 = vmul.f32 0.03125, %v230_v38 }
 0x250   :  { %v237_v40 = vsub.f32 %v226_v34, %v235_v39 }
 0x251   :  { %v233_v41 = vpop.xlane.xlu0 %232 }
 0x252   :  { %v236_v42 = vmul.f32 0.03125, %v233_v41  ;;  %v239_v43 = vmul.f32 %v237_v40, %v237_v40 }
 0x254   :  { %v238_v44 = vsub.f32 %v227_v36, %v236_v42  ;;  %v241_v45 = vsel %vm43_vm0, %v239_v43, 0.0 }
 0x255   :  { %242 = vadd.xlane.f32.xlu1 %v241_v45 }
 0x256   :  { %v240_v46 = vmul.f32 %v238_v44, %v238_v44 }
 0x258   :  { %v244_v47 = vsel %vm43_vm0, %v240_v46, 0.0 }
 0x259   :  { %245 = vadd.xlane.f32.xlu1 %v244_v47 }
 0x2e2   :  { %v243_v48 = vpop.xlane.xlu1 %242 }
 0x2e3   :  { %v247_v49 = vmul.f32 0.03125, %v243_v48 }
 0x2e5   :  { %v249_v50 = vadd.f32 1e-05, %v247_v49 }
 0x2e6   :  { %v246_v51 = vpop.xlane.xlu1 %245 }
 0x2e7   :  { %372 = vrsqrt.f32 %v249_v50  ;;  %v248_v52 = vmul.f32 0.03125, %v246_v51 }
 0x2e9   :  { %v250_v53 = vadd.f32 1e-05, %v248_v52 }
 0x2eb   :  { %374 = vrsqrt.f32 %v250_v53 }
 0x2f1   :  { %v373_v54 = vpop.eup %372 }
 0x2f2   :  { %v253_v56 = vmul.f32 %v373_v54, %v237_v40 }
 0x2f4   :  { %v262_v58 = vmul.f32 %v297_v55, %v253_v56 }
 0x2f5   :  { %v375_v59 = vpop.eup %374 }
 0x2f6   :  { %v254_v60 = vmul.f32 %v375_v59, %v238_v44  ;;  %v271_v61 = vadd.f32 %v298_v57, %v262_v58 }
 0x2f8   :  { %v263_v62 = vmul.f32 %v297_v55, %v254_v60  ;;  %273 = vst.msk [vmem:[#allocation2] sm:$0xff] %vm43_vm0, %v271_v61 }
 0x2fa   :  { %v272_v63 = vadd.f32 %v298_v57, %v263_v62 }
 0x2fc   :  { %274 = vst.msk [vmem:[#allocation2 + $0x8] sm:$0xff] %vm43_vm0, %v272_v63 }
 0x2fd   :  { %387 = shalt.err (!%p384_p4)
}
 0x2fe   :  { %s388_s20 = scalar_lea.hbm %s536_s8, 256 }
 0x2ff   :  { %p389_p5 = scmp.ne.s32.totalorder %s536_s8, %s388_s20  ;;  %p392_p6 = scmp.lt.u32.totalorder %s388_s20, %s536_s8 }
 0x301   :  { %p394_p7 = pnand %p392_p6, %p389_p5 }
 0x303   :  { %397 = shalt.err (!%p394_p7)
}
 0x304   :  { %s401_s24 = smov 128   ;;  %s402_s25 = smov 8  }
 0x305   :  { %286 = dma.vmem_to_hbm [thread:$0]  %s281_s18, 256, %s536_s8, [#allocation3], %s401_s24, %s401_s24, %s402_s25  }
 0x306   :  { %398 = dma.done.wait [#allocation3], 256  }
 0x307   :  { %399 = vsyncadd [#allocation3], 4294967040 }
 0x308   :  { %290 = vsyncpa [#allocation3], 1 }

</bundles_post_ra>
